<compile_context>
chip_gen: v7x
topology: tpu7x:2x2x1
jax: 0.10.0
libtpu: 0.0.40
codegen_flags: <defaults>
</compile_context>

<pallas_src>
import functools
import math

import jax
import jax.numpy as jnp
from jax.experimental import pallas as pl
from jax.experimental.pallas import tpu as pltpu

# 48 MiB scoped VMEM: safe on v7x (64 MiB/TC) and large enough for the 512-wide
# tiles + double buffers.  v5e/v6e (128 MiB) could go higher.
VMEM_LIMIT = 48 * 1024 * 1024


def _compiler_params(semantics):
    return pltpu.CompilerParams(dimension_semantics=semantics,
                                vmem_limit_bytes=VMEM_LIMIT)


def _pick_tile(dim, preferred, multiple):
    """Largest tile <= preferred that evenly divides dim (multiple-aligned)."""
    if dim <= preferred:
        return dim
    t = (preferred // multiple) * multiple
    while t >= multiple:
        if dim % t == 0:
            return t
        t -= multiple
    # TODO(synk): pad awkward (prime-ish) dims instead of a full-axis fallback,
    # which could exceed the VMEM budget; standard BERT shapes never hit this.
    return dim


# --------------------------- tiled linear kernels --------------------------- #

def _linear_kernel(x_ref, w_ref, b_ref, o_ref, acc_ref, *, activation):
    k = pl.program_id(2)

    @pl.when(k == 0)
    def _():
        acc_ref[...] = jnp.zeros_like(acc_ref)

    acc_ref[...] += jnp.dot(x_ref[...], w_ref[...],
                            preferred_element_type=jnp.float32)

    @pl.when(k == pl.num_programs(2) - 1)
    def _():
        y = acc_ref[...] + b_ref[...]
        if activation == "tanh":
            y = jnp.tanh(y)
        elif activation == "gelu":
            # TODO(synk): HF BERT uses erf GELU; tanh approximation is close.
            y = jax.nn.gelu(y, approximate=True)
        elif activation == "sigmoid":
            y = jax.nn.sigmoid(y)
        o_ref[...] = y.astype(o_ref.dtype)


def linear(x, w, b, activation="none", out_dtype=jnp.bfloat16):
    """act(x @ w + b); x:(M,K), w:(K,N) bf16 on the MXU, f32 accumulation."""
    M, K = x.shape
    N = w.shape[1]
    tm = _pick_tile(M, 512, 16)           # bf16 packs 16 rows / sublane group
    tn = _pick_tile(N, 512, 128)
    tk = K if K <= 1024 else _pick_tile(K, 1024, 128)
    grid = (M // tm, N // tn, K // tk)
    return pl.pallas_call(
        functools.partial(_linear_kernel, activation=activation),
        out_shape=jax.ShapeDtypeStruct((M, N), out_dtype),
        grid=grid,
        in_specs=[
            pl.BlockSpec((tm, tk), lambda i, j, k: (i, k)),
            pl.BlockSpec((tk, tn), lambda i, j, k: (k, j)),
            pl.BlockSpec((1, tn), lambda i, j, k: (0, j)),
        ],
        out_specs=pl.BlockSpec((tm, tn), lambda i, j, k: (i, j)),
        scratch_shapes=[pltpu.VMEM((tm, tn), jnp.float32)],
        compiler_params=_compiler_params(("parallel", "parallel", "arbitrary")),
    )(x.astype(jnp.bfloat16), w.astype(jnp.bfloat16),
      b.reshape(1, N).astype(jnp.float32))


def _linear_add_ln_kernel(x_ref, w_ref, b_ref, r_ref, g_ref, lb_ref,
                          o_ref, acc_ref, *, eps):
    k = pl.program_id(1)

    @pl.when(k == 0)
    def _():
        acc_ref[...] = jnp.zeros_like(acc_ref)

    acc_ref[...] += jnp.dot(x_ref[...], w_ref[...],
                            preferred_element_type=jnp.float32)

    @pl.when(k == pl.num_programs(1) - 1)
    def _():
        x = acc_ref[...] + b_ref[...] + r_ref[...].astype(jnp.float32)
        # two-pass mean/variance (avoids E[x^2]-E[x]^2 cancellation)
        mu = jnp.mean(x, axis=-1, keepdims=True)
        d = x - mu
        var = jnp.mean(d * d, axis=-1, keepdims=True)
        y = d * jax.lax.rsqrt(var + eps)
        o_ref[...] = (y * g_ref[...] + lb_ref[...]).astype(o_ref.dtype)


def linear_add_ln(x, w, b, residual, gamma, beta, eps=1e-12,
                  out_dtype=jnp.bfloat16):
    """LayerNorm((x @ w + b) + residual). LN spans the full output row, so the
    N axis (= hidden size) stays un-tiled; M parallel, K reduction."""
    M, K = x.shape
    N = w.shape[1]
    tm = _pick_tile(M, 512, 16)
    tk = K if K <= 1024 else _pick_tile(K, 1024, 128)
    grid = (M // tm, K // tk)
    return pl.pallas_call(
        functools.partial(_linear_add_ln_kernel, eps=eps),
        out_shape=jax.ShapeDtypeStruct((M, N), out_dtype),
        grid=grid,
        in_specs=[
            pl.BlockSpec((tm, tk), lambda i, k: (i, k)),
            pl.BlockSpec((tk, N), lambda i, k: (k, 0)),
            pl.BlockSpec((1, N), lambda i, k: (0, 0)),
            pl.BlockSpec((tm, N), lambda i, k: (i, 0)),
            pl.BlockSpec((1, N), lambda i, k: (0, 0)),
            pl.BlockSpec((1, N), lambda i, k: (0, 0)),
        ],
        out_specs=pl.BlockSpec((tm, N), lambda i, k: (i, 0)),
        scratch_shapes=[pltpu.VMEM((tm, N), jnp.float32)],
        compiler_params=_compiler_params(("parallel", "arbitrary")),
    )(x.astype(jnp.bfloat16), w.astype(jnp.bfloat16),
      b.reshape(1, N).astype(jnp.float32),
      residual,
      gamma.reshape(1, N).astype(jnp.float32),
      beta.reshape(1, N).astype(jnp.float32))


# ----------------- fused embedding add + LayerNorm (no residual) ------------ #

def _emb_ln_kernel(w_ref, p_ref, t_ref, g_ref, b_ref, o_ref, *, eps):
    x = (w_ref[0].astype(jnp.float32) + p_ref[...].astype(jnp.float32)
         + t_ref[...].astype(jnp.float32))
    mu = jnp.mean(x, axis=-1, keepdims=True)
    d = x - mu
    var = jnp.mean(d * d, axis=-1, keepdims=True)
    y = d * jax.lax.rsqrt(var + eps)
    o_ref[0] = (y * g_ref[...] + b_ref[...]).astype(o_ref.dtype)


def emb_add_layernorm(word, pos, typ, gamma, beta, eps=1e-12,
                      out_dtype=jnp.bfloat16):
    """LayerNorm(word + pos + typ); word:(B,S,H) bf16, pos:(S,H), typ:(1,H)."""
    B, S, H = word.shape
    ts = _pick_tile(S, 512, 8)
    return pl.pallas_call(
        functools.partial(_emb_ln_kernel, eps=eps),
        out_shape=jax.ShapeDtypeStruct((B, S, H), out_dtype),
        grid=(B, S // ts),
        in_specs=[pl.BlockSpec((1, ts, H), lambda b, s: (b, s, 0)),
                  pl.BlockSpec((ts, H), lambda b, s: (s, 0)),
                  pl.BlockSpec((1, H), lambda b, s: (0, 0)),
                  pl.BlockSpec((1, H), lambda b, s: (0, 0)),
                  pl.BlockSpec((1, H), lambda b, s: (0, 0))],
        out_specs=pl.BlockSpec((1, ts, H), lambda b, s: (b, s, 0)),
        compiler_params=_compiler_params(("parallel", "parallel")),
    )(word, pos, typ,
      gamma.reshape(1, H).astype(jnp.float32),
      beta.reshape(1, H).astype(jnp.float32))


# --------------------------------- attention -------------------------------- #

def _attention_kernel(q_ref, k_ref, v_ref, m_ref, o_ref, *,
                      heads_per_block, head_dim, scale):
    bias = m_ref[0].astype(jnp.float32)                 # (1, S) additive mask
    parts = []
    for i in range(heads_per_block):                    # at most 2, static
        lo, hi = i * head_dim, (i + 1) * head_dim
        q = q_ref[0, :, lo:hi]                          # (tq, Dh) bf16
        k = k_ref[0, :, lo:hi]                          # (S,  Dh) bf16
        v = v_ref[0, :, lo:hi]                          # (S,  Dh) bf16
        s = jax.lax.dot_general(q, k, (((1,), (1,)), ((), ())),
                                preferred_element_type=jnp.float32)
        s = s * scale + bias                            # softmax math in f32
        s = s - jnp.max(s, axis=-1, keepdims=True)
        p = jnp.exp(s)
        p = p * pl.reciprocal(jnp.sum(p, axis=-1, keepdims=True), approx=True)
        parts.append(jnp.dot(p.astype(v.dtype), v,
                             preferred_element_type=jnp.float32))
    ctx = parts[0] if len(parts) == 1 else jnp.concatenate(parts, axis=-1)
    o_ref[0] = ctx.astype(o_ref.dtype)                  # dense 128-lane store


def attention(qkv, mask_bias, num_heads, head_dim):
    """qkv: (B, S, 3H) fused projections (bf16); mask_bias: (B, 1, S) f32.

    Grid = (batch, head-pair, Q row block): three parallel axes, lane-aligned
    128-wide head-pair slices of the fused QKV tensor selected directly by the
    BlockSpec index maps (no JAX-side per-head transposes, no 64-lane stores).
    """
    B, S, H3 = qkv.shape
    H = H3 // 3
    if 128 % head_dim == 0:
        hpb = min(num_heads, 128 // head_dim)
        while num_heads % hpb != 0:
            hpb -= 1
    else:
        hpb = 1
    W = hpb * head_dim                       # lane width per step (128 for BERT)
    nhb = num_heads // hpb                   # head blocks
    kv_off = H // W                          # lane-block offset of K inside QKV
    tq = _pick_tile(S, 512, 8)
    scale = 1.0 / math.sqrt(head_dim)
    # TODO(synk): for very long sequences also tile K/V (flash-style online
    # softmax) so the per-step (S, W) K/V slabs and (tq, S) scores stay small.
    return pl.pallas_call(
        functools.partial(_attention_kernel, heads_per_block=hpb,
                          head_dim=head_dim, scale=scale),
        out_shape=jax.ShapeDtypeStruct((B, S, H), jnp.bfloat16),
        grid=(B, nhb, S // tq),
        in_specs=[
            pl.BlockSpec((1, tq, W), lambda b, h, qi: (b, qi, h)),
            pl.BlockSpec((1, S, W), lambda b, h, qi: (b, 0, kv_off + h)),
            pl.BlockSpec((1, S, W), lambda b, h, qi: (b, 0, 2 * kv_off + h)),
            pl.BlockSpec((1, 1, S), lambda b, h, qi: (b, 0, 0)),
        ],
        out_specs=pl.BlockSpec((1, tq, W), lambda b, h, qi: (b, qi, h)),
        compiler_params=_compiler_params(("parallel", "parallel", "parallel")),
    )(qkv, qkv, qkv, mask_bias)


# ------------------------------ model (glue) -------------------------------- #

def encoder_layer(h, mask_bias, lp, B, S, H, num_heads):
    Dh = H // num_heads

    # fused Q|K|V projection: one (H, 3H) matmul, one HBM read of h
    qkv = linear(h, lp["qkv_w"], lp["qkv_b"])                    # (B*S, 3H) bf16
    ctx = attention(qkv.reshape(B, S, 3 * H), mask_bias, num_heads, Dh)
    ctx = ctx.reshape(B * S, H)                                  # free reshape

    # attention-output projection fused with residual add + LayerNorm
    h = linear_add_ln(ctx, lp["ao_w"], lp["ao_b"], h, lp["ln1_g"], lp["ln1_b"])

    inter = linear(h, lp["i_w"], lp["i_b"], activation="gelu")
    # FFN-output projection fused with residual add + LayerNorm
    h = linear_add_ln(inter, lp["o_w"], lp["o_b"], h, lp["ln2_g"], lp["ln2_b"])
    return h


def tag_prediction_forward(params, input_ids, attention_mask, cfg):
    B, S = input_ids.shape
    H = cfg["hidden"]

    # Embedding gathers stay in plain JAX glue (token-type ids are all zero);
    # the add + LayerNorm are fused in one Pallas kernel (bf16 tables).
    word = jnp.take(params["word_emb"], input_ids, axis=0)          # (B, S, H)
    pos = jnp.take(params["pos_emb"], jnp.arange(S), axis=0)        # (S, H)
    typ = params["type_emb"][0].reshape(1, H)                       # (1, H)
    h = emb_add_layernorm(word, pos, typ,
                          params["emb_ln_g"], params["emb_ln_b"])   # (B,S,H) bf16
    h = h.reshape(B * S, H)

    # BERT-style additive attention-mask bias, kept at (B, 1, S) (no repeat).
    mask_bias = ((1.0 - attention_mask.astype(jnp.float32)) * -10000.0
                 ).reshape(B, 1, S)

    for lp in params["layers"]:
        h = encoder_layer(h, mask_bias, lp, B, S, H, cfg["heads"])

    # Pooler: first ([CLS]) token -> dense -> tanh.
    cls = h.reshape(B, S, H)[:, 0, :]
    pooled = linear(cls, params["pool_w"], params["pool_b"], activation="tanh")

    # Dropout(0.3): identity in eval mode (matches model.eval() inference).
    x = pooled

    # Classifier + sigmoid.
    return linear(x, params["cls_w"], params["cls_b"],
                  activation="sigmoid", out_dtype=jnp.float32)


# --------------------------- deterministic params --------------------------- #

def init_params(key, cfg):
    H, I, L = cfg["hidden"], cfg["inter"], cfg["labels"]

    def nrm(k, shape, scale=0.02, dtype=jnp.bfloat16):
        return (scale * jax.random.normal(k, shape, jnp.float32)).astype(dtype)

    keys = iter(jax.random.split(key, 256))
    params = {
        "word_emb": nrm(next(keys), (cfg["vocab"], H)),      # bf16 tables
        "pos_emb": nrm(next(keys), (cfg["max_pos"], H)),
        "type_emb": nrm(next(keys), (2, H)),
        "emb_ln_g": jnp.ones((H,), jnp.float32),
        "emb_ln_b": jnp.zeros((H,), jnp.float32),
        "pool_w": nrm(next(keys), (H, H)),
        "pool_b": jnp.zeros((H,), jnp.float32),
        "cls_w": nrm(next(keys), (H, L)),
        "cls_b": jnp.zeros((L,), jnp.float32),
        "layers": [],
    }
    for _ in range(cfg["layers"]):
        q_w = nrm(next(keys), (H, H))
        k_w = nrm(next(keys), (H, H))
        v_w = nrm(next(keys), (H, H))
        lp = {
            # fused Q|K|V projection weights/bias
            "qkv_w": jnp.concatenate([q_w, k_w, v_w], axis=1),    # (H, 3H) bf16
            "qkv_b": jnp.zeros((3 * H,), jnp.float32),
            "ao_w": nrm(next(keys), (H, H)), "ao_b": jnp.zeros((H,), jnp.float32),
            "ln1_g": jnp.ones((H,), jnp.float32), "ln1_b": jnp.zeros((H,), jnp.float32),
            "i_w": nrm(next(keys), (H, I)), "i_b": jnp.zeros((I,), jnp.float32),
            "o_w": nrm(next(keys), (I, H)), "o_b": jnp.zeros((H,), jnp.float32),
            "ln2_g": jnp.ones((H,), jnp.float32), "ln2_b": jnp.zeros((H,), jnp.float32),
        }
        params["layers"].append(lp)
    return params


# ----------------------------------- main ----------------------------------- #

if __name__ == "__main__":
    cfg = dict(vocab=64, max_pos=32, hidden=128, heads=2,
               layers=2, inter=256, labels=8)
    B, S = 2, 8

    root = jax.random.PRNGKey(0)
    params = init_params(root, cfg)

    input_ids = jax.random.randint(jax.random.fold_in(root, 1),
                                   (B, S), 0, cfg["vocab"], dtype=jnp.int32)
    attention_mask = jnp.ones((B, S), jnp.int32).at[1, 6:].set(0)

    fwd = jax.jit(lambda p, ids, m: tag_prediction_forward(p, ids, m, cfg))
    probs = jax.block_until_ready(fwd(params, input_ids, attention_mask))

    assert probs.shape == (B, cfg["labels"])
    assert bool(jnp.all((probs >= 0.0) & (probs <= 1.0)))
    print("KERNEL_OK")
</pallas_src>

<mosaic_0001>
module attributes {stable_mosaic.version = 11 : i64} {
  func.func @_linear_kernel(%arg0: i32, %arg1: i32, %arg2: i32, %arg3: memref<16x128xbf16, #tpu.memory_space<vmem>>, %arg4: memref<128x384xbf16, #tpu.memory_space<vmem>>, %arg5: memref<1x384xf32, #tpu.memory_space<vmem>>, %arg6: memref<16x384xbf16, #tpu.memory_space<vmem>>, %arg7: memref<16x384xf32, #tpu.memory_space<vmem>>) attributes {dimension_semantics = [#tpu.dimension_semantics<parallel>, #tpu.dimension_semantics<parallel>, #tpu.dimension_semantics<arbitrary>], iteration_bounds = array<i64: 1, 1, 1>, scalar_prefetch = 0 : i64, scratch_operands = 1 : i64, tpu.core_type = #tpu.core_type<tc>, window_params = [{transform_indices = @transform_0, window_bounds = array<i64: 16, 128>}, {transform_indices = @transform_1, window_bounds = array<i64: 128, 384>}, {transform_indices = @transform_2, window_bounds = array<i64: 1, 384>}, {transform_indices = @transform_3, window_bounds = array<i64: 16, 384>}]} {
    %c0_i32 = arith.constant 0 : i32
    %0 = arith.cmpi eq, %arg2, %c0_i32 : i32
    %1 = arith.extui %0 : i1 to i32
    %c0_i32_0 = arith.constant 0 : i32
    %2 = arith.cmpi ne, %1, %c0_i32_0 : i32
    scf.if %2 {
      %cst_10 = arith.constant 0.000000e+00 : f32
      %12 = vector.broadcast %cst_10 : f32 to vector<16x384xf32>
      %c0_11 = arith.constant 0 : index
      %c0_12 = arith.constant 0 : index
      %13 = vector.load %arg7[%c0_11, %c0_12] : memref<16x384xf32, #tpu.memory_space<vmem>>, vector<16x384xf32>
      tpu.vector_store %arg7[%c0_11, %c0_12], %12 {strides = array<i32>} : memref<16x384xf32, #tpu.memory_space<vmem>>, vector<16x384xf32>,
    } else {
    }
    %c0 = arith.constant 0 : index
    %c0_1 = arith.constant 0 : index
    %3 = vector.load %arg7[%c0, %c0_1] : memref<16x384xf32, #tpu.memory_space<vmem>>, vector<16x384xf32>
    %c0_2 = arith.constant 0 : index
    %c0_3 = arith.constant 0 : index
    %4 = vector.load %arg3[%c0_2, %c0_3] : memref<16x128xbf16, #tpu.memory_space<vmem>>, vector<16x128xbf16>
    %c0_4 = arith.constant 0 : index
    %c0_5 = arith.constant 0 : index
    %5 = vector.load %arg4[%c0_4, %c0_5] : memref<128x384xbf16, #tpu.memory_space<vmem>>, vector<128x384xbf16>
    %cst = arith.constant dense<0.000000e+00> : vector<16x384xf32>
    %6 = tpu.matmul %4, %5, %cst {dimension_numbers = #tpu.dot_dimension_numbers<[1], [0], [0], [1], [0, 0, 1, 1], [], []>} : vector<16x128xbf16>, vector<128x384xbf16>, vector<16x384xf32> -> vector<16x384xf32>
    %7 = arith.addf %3, %6 : vector<16x384xf32>
    %c0_6 = arith.constant 0 : index
    %c0_7 = arith.constant 0 : index
    %8 = vector.load %arg7[%c0_6, %c0_7] : memref<16x384xf32, #tpu.memory_space<vmem>>, vector<16x384xf32>
    tpu.vector_store %arg7[%c0_6, %c0_7], %7 {strides = array<i32>} : memref<16x384xf32, #tpu.memory_space<vmem>>, vector<16x384xf32>,
    %c0_i32_8 = arith.constant 0 : i32
    %9 = arith.cmpi eq, %arg2, %c0_i32_8 : i32
    %10 = arith.extui %9 : i1 to i32
    %c0_i32_9 = arith.constant 0 : i32
    %11 = arith.cmpi ne, %10, %c0_i32_9 : i32
    scf.if %11 {
      %c0_10 = arith.constant 0 : index
      %c0_11 = arith.constant 0 : index
      %12 = vector.load %arg7[%c0_10, %c0_11] : memref<16x384xf32, #tpu.memory_space<vmem>>, vector<16x384xf32>
      %c0_12 = arith.constant 0 : index
      %c0_13 = arith.constant 0 : index
      %13 = vector.load %arg5[%c0_12, %c0_13] : memref<1x384xf32, #tpu.memory_space<vmem>>, vector<1x384xf32>
      %14 = vector.broadcast %13 : vector<1x384xf32> to vector<16x384xf32>
      %15 = arith.addf %12, %14 : vector<16x384xf32>
      %16 = arith.truncf %15 : vector<16x384xf32> to vector<16x384xbf16>
      %c0_14 = arith.constant 0 : index
      %c0_15 = arith.constant 0 : index
      %17 = vector.load %arg6[%c0_14, %c0_15] : memref<16x384xbf16, #tpu.memory_space<vmem>>, vector<16x384xbf16>
      tpu.vector_store %arg6[%c0_14, %c0_15], %16 {strides = array<i32>} : memref<16x384xbf16, #tpu.memory_space<vmem>>, vector<16x384xbf16>,
    } else {
    }
    return
  }
  func.func @transform_0(%arg0: i32, %arg1: i32, %arg2: i32) -> (i32, i32) {
    %c0_i32 = arith.constant 0 : i32
    return %arg0, %arg2 : i32, i32
  }
  func.func @transform_1(%arg0: i32, %arg1: i32, %arg2: i32) -> (i32, i32) {
    %c0_i32 = arith.constant 0 : i32
    return %arg2, %arg1 : i32, i32
  }
  func.func @transform_2(%arg0: i32, %arg1: i32, %arg2: i32) -> (i32, i32) {
    %c0_i32 = arith.constant 0 : i32
    %c0_i32_0 = arith.constant 0 : i32
    return %c0_i32, %arg1 : i32, i32
  }
  func.func @transform_3(%arg0: i32, %arg1: i32, %arg2: i32) -> (i32, i32) {
    %c0_i32 = arith.constant 0 : i32
    return %arg0, %arg1 : i32, i32
  }
}

module attributes {stable_mosaic.version = 11 : i64} {
  func.func @_emb_ln_kernel(%arg0: i32, %arg1: i32, %arg2: memref<1x8x128xbf16, #tpu.memory_space<vmem>>, %arg3: memref<8x128xbf16, #tpu.memory_space<vmem>>, %arg4: memref<1x128xbf16, #tpu.memory_space<vmem>>, %arg5: memref<1x128xf32, #tpu.memory_space<vmem>>, %arg6: memref<1x128xf32, #tpu.memory_space<vmem>>, %arg7: memref<1x8x128xbf16, #tpu.memory_space<vmem>>) attributes {dimension_semantics = [#tpu.dimension_semantics<parallel>, #tpu.dimension_semantics<parallel>], iteration_bounds = array<i64: 2, 1>, scalar_prefetch = 0 : i64, scratch_operands = 0 : i64, tpu.core_type = #tpu.core_type<tc>, window_params = [{transform_indices = @transform_0, window_bounds = array<i64: 1, 8, 128>}, {transform_indices = @transform_1, window_bounds = array<i64: 8, 128>}, {pipeline_mode = #tpu.pipeline_mode<synchronous>, transform_indices = @transform_2, window_bounds = array<i64: 1, 128>}, {pipeline_mode = #tpu.pipeline_mode<synchronous>, transform_indices = @transform_3, window_bounds = array<i64: 1, 128>}, {pipeline_mode = #tpu.pipeline_mode<synchronous>, transform_indices = @transform_4, window_bounds = array<i64: 1, 128>}, {transform_indices = @transform_5, window_bounds = array<i64: 1, 8, 128>}]} {
    %c0 = arith.constant 0 : index
    %c0_0 = arith.constant 0 : index
    %c0_1 = arith.constant 0 : index
    %0 = vector.load %arg2[%c0, %c0_0, %c0_1] : memref<1x8x128xbf16, #tpu.memory_space<vmem>>, vector<1x8x128xbf16>
    %1 = vector.shape_cast %0 : vector<1x8x128xbf16> to vector<8x128xbf16>
    %2 = arith.extf %1 : vector<8x128xbf16> to vector<8x128xf32>
    %c0_2 = arith.constant 0 : index
    %c0_3 = arith.constant 0 : index
    %3 = vector.load %arg3[%c0_2, %c0_3] : memref<8x128xbf16, #tpu.memory_space<vmem>>, vector<8x128xbf16>
    %4 = arith.extf %3 : vector<8x128xbf16> to vector<8x128xf32>
    %5 = arith.addf %2, %4 : vector<8x128xf32>
    %c0_4 = arith.constant 0 : index
    %c0_5 = arith.constant 0 : index
    %6 = vector.load %arg4[%c0_4, %c0_5] : memref<1x128xbf16, #tpu.memory_space<vmem>>, vector<1x128xbf16>
    %7 = arith.extf %6 : vector<1x128xbf16> to vector<1x128xf32>
    %8 = vector.broadcast %7 : vector<1x128xf32> to vector<8x128xf32>
    %9 = arith.addf %5, %8 : vector<8x128xf32>
    %cst = arith.constant dense<0.000000e+00> : vector<8xf32>
    %10 = vector.multi_reduction <add>, %9, %cst [1] : vector<8x128xf32> to vector<8xf32>
    %11 = vector.shape_cast %10 : vector<8xf32> to vector<8x1xf32>
    %cst_6 = arith.constant 1.280000e+02 : f32
    %12 = vector.broadcast %cst_6 : f32 to vector<8x1xf32>
    %13 = arith.divf %11, %12 : vector<8x1xf32>
    %14 = vector.broadcast %13 : vector<8x1xf32> to vector<8x128xf32>
    %15 = arith.subf %9, %14 : vector<8x128xf32>
    %16 = arith.mulf %15, %15 : vector<8x128xf32>
    %cst_7 = arith.constant dense<0.000000e+00> : vector<8xf32>
    %17 = vector.multi_reduction <add>, %16, %cst_7 [1] : vector<8x128xf32> to vector<8xf32>
    %18 = vector.shape_cast %17 : vector<8xf32> to vector<8x1xf32>
    %cst_8 = arith.constant 1.280000e+02 : f32
    %19 = vector.broadcast %cst_8 : f32 to vector<8x1xf32>
    %20 = arith.divf %18, %19 : vector<8x1xf32>
    %cst_9 = arith.constant 9.99999996E-13 : f32
    %21 = vector.broadcast %cst_9 : f32 to vector<8x1xf32>
    %22 = arith.addf %20, %21 : vector<8x1xf32>
    %23 = math.rsqrt %22 : vector<8x1xf32>
    %24 = vector.broadcast %23 : vector<8x1xf32> to vector<8x128xf32>
    %25 = arith.mulf %15, %24 : vector<8x128xf32>
    %c0_10 = arith.constant 0 : index
    %c0_11 = arith.constant 0 : index
    %26 = vector.load %arg5[%c0_10, %c0_11] : memref<1x128xf32, #tpu.memory_space<vmem>>, vector<1x128xf32>
    %27 = vector.broadcast %26 : vector<1x128xf32> to vector<8x128xf32>
    %28 = arith.mulf %25, %27 : vector<8x128xf32>
    %c0_12 = arith.constant 0 : index
    %c0_13 = arith.constant 0 : index
    %29 = vector.load %arg6[%c0_12, %c0_13] : memref<1x128xf32, #tpu.memory_space<vmem>>, vector<1x128xf32>
    %30 = vector.broadcast %29 : vector<1x128xf32> to vector<8x128xf32>
    %31 = arith.addf %28, %30 : vector<8x128xf32>
    %32 = arith.truncf %31 : vector<8x128xf32> to vector<8x128xbf16>
    %c0_14 = arith.constant 0 : index
    %c0_15 = arith.constant 0 : index
    %c0_16 = arith.constant 0 : index
    %33 = vector.load %arg7[%c0_14, %c0_15, %c0_16] : memref<1x8x128xbf16, #tpu.memory_space<vmem>>, vector<1x8x128xbf16>
    %34 = vector.shape_cast %33 : vector<1x8x128xbf16> to vector<8x128xbf16>
    %35 = vector.shape_cast %32 : vector<8x128xbf16> to vector<1x8x128xbf16>
    tpu.vector_store %arg7[%c0_14, %c0_15, %c0_16], %35 {strides = array<i32>} : memref<1x8x128xbf16, #tpu.memory_space<vmem>>, vector<1x8x128xbf16>,
    return
  }
  func.func @transform_0(%arg0: i32, %arg1: i32) -> (i32, i32, i32) {
    %c0_i32 = arith.constant 0 : i32
    %c0_i32_0 = arith.constant 0 : i32
    return %arg0, %arg1, %c0_i32 : i32, i32, i32
  }
  func.func @transform_1(%arg0: i32, %arg1: i32) -> (i32, i32) {
    %c0_i32 = arith.constant 0 : i32
    %c0_i32_0 = arith.constant 0 : i32
    return %arg1, %c0_i32 : i32, i32
  }
  func.func @transform_2(%arg0: i32, %arg1: i32) -> (i32, i32) {
    %c0_i32 = arith.constant 0 : i32
    %c0_i32_0 = arith.constant 0 : i32
    %c0_i32_1 = arith.constant 0 : i32
    return %c0_i32, %c0_i32_0 : i32, i32
  }
  func.func @transform_3(%arg0: i32, %arg1: i32) -> (i32, i32) {
    %c0_i32 = arith.constant 0 : i32
    %c0_i32_0 = arith.constant 0 : i32
    %c0_i32_1 = arith.constant 0 : i32
    return %c0_i32, %c0_i32_0 : i32, i32
  }
  func.func @transform_4(%arg0: i32, %arg1: i32) -> (i32, i32) {
    %c0_i32 = arith.constant 0 : i32
    %c0_i32_0 = arith.constant 0 : i32
    %c0_i32_1 = arith.constant 0 : i32
    return %c0_i32, %c0_i32_0 : i32, i32
  }
  func.func @transform_5(%arg0: i32, %arg1: i32) -> (i32, i32, i32) {
    %c0_i32 = arith.constant 0 : i32
    %c0_i32_0 = arith.constant 0 : i32
    return %arg0, %arg1, %c0_i32 : i32, i32, i32
  }
}

module attributes {stable_mosaic.version = 11 : i64} {
  func.func @_attention_kernel(%arg0: i32, %arg1: i32, %arg2: i32, %arg3: memref<1x8x128xbf16, #tpu.memory_space<vmem>>, %arg4: memref<1x8x128xbf16, #tpu.memory_space<vmem>>, %arg5: memref<1x8x128xbf16, #tpu.memory_space<vmem>>, %arg6: memref<1x1x8xf32, #tpu.memory_space<vmem>>, %arg7: memref<1x8x128xbf16, #tpu.memory_space<vmem>>) attributes {dimension_semantics = [#tpu.dimension_semantics<parallel>, #tpu.dimension_semantics<parallel>, #tpu.dimension_semantics<parallel>], iteration_bounds = array<i64: 2, 1, 1>, scalar_prefetch = 0 : i64, scratch_operands = 0 : i64, tpu.core_type = #tpu.core_type<tc>, window_params = [{transform_indices = @transform_0, window_bounds = array<i64: 1, 8, 128>}, {transform_indices = @transform_1, window_bounds = array<i64: 1, 8, 128>}, {transform_indices = @transform_2, window_bounds = array<i64: 1, 8, 128>}, {transform_indices = @transform_3, window_bounds = array<i64: 1, 1, 8>}, {transform_indices = @transform_4, window_bounds = array<i64: 1, 8, 128>}]} {
    %c0 = arith.constant 0 : index
    %c0_0 = arith.constant 0 : index
    %c0_1 = arith.constant 0 : index
    %0 = vector.load %arg6[%c0, %c0_0, %c0_1] : memref<1x1x8xf32, #tpu.memory_space<vmem>>, vector<1x1x8xf32>
    %1 = vector.shape_cast %0 : vector<1x1x8xf32> to vector<1x8xf32>
    %c0_2 = arith.constant 0 : index
    %c0_3 = arith.constant 0 : index
    %c0_4 = arith.constant 0 : index
    %2 = vector.load %arg3[%c0_2, %c0_3, %c0_4] : memref<1x8x128xbf16, #tpu.memory_space<vmem>>, vector<1x8x64xbf16>
    %3 = vector.shape_cast %2 : vector<1x8x64xbf16> to vector<8x64xbf16>
    %c0_5 = arith.constant 0 : index
    %c0_6 = arith.constant 0 : index
    %c0_7 = arith.constant 0 : index
    %4 = vector.load %arg4[%c0_5, %c0_6, %c0_7] : memref<1x8x128xbf16, #tpu.memory_space<vmem>>, vector<1x8x64xbf16>
    %5 = vector.shape_cast %4 : vector<1x8x64xbf16> to vector<8x64xbf16>
    %c0_8 = arith.constant 0 : index
    %c0_9 = arith.constant 0 : index
    %c0_10 = arith.constant 0 : index
    %6 = vector.load %arg5[%c0_8, %c0_9, %c0_10] : memref<1x8x128xbf16, #tpu.memory_space<vmem>>, vector<1x8x64xbf16>
    %7 = vector.shape_cast %6 : vector<1x8x64xbf16> to vector<8x64xbf16>
    %cst = arith.constant dense<0.000000e+00> : vector<8x8xf32>
    %8 = tpu.matmul %3, %5, %cst {dimension_numbers = #tpu.dot_dimension_numbers<[1], [1], [0], [0], [0, 0, 1, 0], [], []>} : vector<8x64xbf16>, vector<8x64xbf16>, vector<8x8xf32> -> vector<8x8xf32>
    %cst_11 = arith.constant 1.250000e-01 : f32
    %9 = vector.broadcast %cst_11 : f32 to vector<8x8xf32>
    %10 = arith.mulf %8, %9 : vector<8x8xf32>
    %11 = vector.broadcast %1 : vector<1x8xf32> to vector<8x8xf32>
    %12 = arith.addf %10, %11 : vector<8x8xf32>
    %cst_12 = arith.constant dense<0xFF800000> : vector<8xf32>
    %13 = vector.multi_reduction <maximumf>, %12, %cst_12 [1] : vector<8x8xf32> to vector<8xf32>
    %14 = vector.shape_cast %13 : vector<8xf32> to vector<8x1xf32>
    %15 = vector.broadcast %14 : vector<8x1xf32> to vector<8x8xf32>
    %16 = arith.subf %12, %15 : vector<8x8xf32>
    %17 = math.exp %16 : vector<8x8xf32>
    %cst_13 = arith.constant dense<0.000000e+00> : vector<8xf32>
    %18 = vector.multi_reduction <add>, %17, %cst_13 [1] : vector<8x8xf32> to vector<8xf32>
    %19 = vector.shape_cast %18 : vector<8xf32> to vector<8x1xf32>
    %20 = tpu.reciprocal %19 {approx = true} : vector<8x1xf32> -> vector<8x1xf32>
    %21 = vector.broadcast %20 : vector<8x1xf32> to vector<8x8xf32>
    %22 = arith.mulf %17, %21 : vector<8x8xf32>
    %23 = arith.truncf %22 : vector<8x8xf32> to vector<8x8xbf16>
    %cst_14 = arith.constant dense<0.000000e+00> : vector<8x64xf32>
    %24 = tpu.matmul %23, %7, %cst_14 {dimension_numbers = #tpu.dot_dimension_numbers<[1], [0], [0], [1], [0, 0, 1, 1], [], []>} : vector<8x8xbf16>, vector<8x64xbf16>, vector<8x64xf32> -> vector<8x64xf32>
    %c0_15 = arith.constant 0 : index
    %c0_16 = arith.constant 0 : index
    %c64 = arith.constant 64 : index
    %25 = vector.load %arg3[%c0_15, %c0_16, %c64] : memref<1x8x128xbf16, #tpu.memory_space<vmem>>, vector<1x8x64xbf16>
    %26 = vector.shape_cast %25 : vector<1x8x64xbf16> to vector<8x64xbf16>
    %c0_17 = arith.constant 0 : index
    %c0_18 = arith.constant 0 : index
    %c64_19 = arith.constant 64 : index
    %27 = vector.load %arg4[%c0_17, %c0_18, %c64_19] : memref<1x8x128xbf16, #tpu.memory_space<vmem>>, vector<1x8x64xbf16>
    %28 = vector.shape_cast %27 : vector<1x8x64xbf16> to vector<8x64xbf16>
    %c0_20 = arith.constant 0 : index
    %c0_21 = arith.constant 0 : index
    %c64_22 = arith.constant 64 : index
    %29 = vector.load %arg5[%c0_20, %c0_21, %c64_22] : memref<1x8x128xbf16, #tpu.memory_space<vmem>>, vector<1x8x64xbf16>
    %30 = vector.shape_cast %29 : vector<1x8x64xbf16> to vector<8x64xbf16>
    %cst_23 = arith.constant dense<0.000000e+00> : vector<8x8xf32>
    %31 = tpu.matmul %26, %28, %cst_23 {dimension_numbers = #tpu.dot_dimension_numbers<[1], [1], [0], [0], [0, 0, 1, 0], [], []>} : vector<8x64xbf16>, vector<8x64xbf16>, vector<8x8xf32> -> vector<8x8xf32>
    %cst_24 = arith.constant 1.250000e-01 : f32
    %32 = vector.broadcast %cst_24 : f32 to vector<8x8xf32>
    %33 = arith.mulf %31, %32 : vector<8x8xf32>
    %34 = vector.broadcast %1 : vector<1x8xf32> to vector<8x8xf32>
    %35 = arith.addf %33, %34 : vector<8x8xf32>
    %cst_25 = arith.constant dense<0xFF800000> : vector<8xf32>
    %36 = vector.multi_reduction <maximumf>, %35, %cst_25 [1] : vector<8x8xf32> to vector<8xf32>
    %37 = vector.shape_cast %36 : vector<8xf32> to vector<8x1xf32>
    %38 = vector.broadcast %37 : vector<8x1xf32> to vector<8x8xf32>
    %39 = arith.subf %35, %38 : vector<8x8xf32>
    %40 = math.exp %39 : vector<8x8xf32>
    %cst_26 = arith.constant dense<0.000000e+00> : vector<8xf32>
    %41 = vector.multi_reduction <add>, %40, %cst_26 [1] : vector<8x8xf32> to vector<8xf32>
    %42 = vector.shape_cast %41 : vector<8xf32> to vector<8x1xf32>
    %43 = tpu.reciprocal %42 {approx = true} : vector<8x1xf32> -> vector<8x1xf32>
    %44 = vector.broadcast %43 : vector<8x1xf32> to vector<8x8xf32>
    %45 = arith.mulf %40, %44 : vector<8x8xf32>
    %46 = arith.truncf %45 : vector<8x8xf32> to vector<8x8xbf16>
    %cst_27 = arith.constant dense<0.000000e+00> : vector<8x64xf32>
    %47 = tpu.matmul %46, %30, %cst_27 {dimension_numbers = #tpu.dot_dimension_numbers<[1], [0], [0], [1], [0, 0, 1, 1], [], []>} : vector<8x8xbf16>, vector<8x64xbf16>, vector<8x64xf32> -> vector<8x64xf32>
    %48 = tpu.concatenate %24, %47 in 1 : vector<8x64xf32>, vector<8x64xf32> -> vector<8x128xf32>
    %49 = arith.truncf %48 : vector<8x128xf32> to vector<8x128xbf16>
    %c0_28 = arith.constant 0 : index
    %c0_29 = arith.constant 0 : index
    %c0_30 = arith.constant 0 : index
    %50 = vector.load %arg7[%c0_28, %c0_29, %c0_30] : memref<1x8x128xbf16, #tpu.memory_space<vmem>>, vector<1x8x128xbf16>
    %51 = vector.shape_cast %50 : vector<1x8x128xbf16> to vector<8x128xbf16>
    %52 = vector.shape_cast %49 : vector<8x128xbf16> to vector<1x8x128xbf16>
    tpu.vector_store %arg7[%c0_28, %c0_29, %c0_30], %52 {strides = array<i32>} : memref<1x8x128xbf16, #tpu.memory_space<vmem>>, vector<1x8x128xbf16>,
    return
  }
  func.func @transform_0(%arg0: i32, %arg1: i32, %arg2: i32) -> (i32, i32, i32) {
    %c0_i32 = arith.constant 0 : i32
    return %arg0, %arg2, %arg1 : i32, i32, i32
  }
  func.func @transform_1(%arg0: i32, %arg1: i32, %arg2: i32) -> (i32, i32, i32) {
    %c1_i32 = arith.constant 1 : i32
    %0 = arith.addi %c1_i32, %arg1 : i32
    %c0_i32 = arith.constant 0 : i32
    %c0_i32_0 = arith.constant 0 : i32
    return %arg0, %c0_i32, %0 : i32, i32, i32
  }
  func.func @transform_2(%arg0: i32, %arg1: i32, %arg2: i32) -> (i32, i32, i32) {
    %c2_i32 = arith.constant 2 : i32
    %0 = arith.addi %c2_i32, %arg1 : i32
    %c0_i32 = arith.constant 0 : i32
    %c0_i32_0 = arith.constant 0 : i32
    return %arg0, %c0_i32, %0 : i32, i32, i32
  }
  func.func @transform_3(%arg0: i32, %arg1: i32, %arg2: i32) -> (i32, i32, i32) {
    %c0_i32 = arith.constant 0 : i32
    %c0_i32_0 = arith.constant 0 : i32
    %c0_i32_1 = arith.constant 0 : i32
    return %arg0, %c0_i32, %c0_i32_0 : i32, i32, i32
  }
  func.func @transform_4(%arg0: i32, %arg1: i32, %arg2: i32) -> (i32, i32, i32) {
    %c0_i32 = arith.constant 0 : i32
    return %arg0, %arg2, %arg1 : i32, i32, i32
  }
}

module attributes {stable_mosaic.version = 11 : i64} {
  func.func @_linear_add_ln_kernel(%arg0: i32, %arg1: i32, %arg2: memref<16x128xbf16, #tpu.memory_space<vmem>>, %arg3: memref<128x128xbf16, #tpu.memory_space<vmem>>, %arg4: memref<1x128xf32, #tpu.memory_space<vmem>>, %arg5: memref<16x128xbf16, #tpu.memory_space<vmem>>, %arg6: memref<1x128xf32, #tpu.memory_space<vmem>>, %arg7: memref<1x128xf32, #tpu.memory_space<vmem>>, %arg8: memref<16x128xbf16, #tpu.memory_space<vmem>>, %arg9: memref<16x128xf32, #tpu.memory_space<vmem>>) attributes {dimension_semantics = [#tpu.dimension_semantics<parallel>, #tpu.dimension_semantics<arbitrary>], iteration_bounds = array<i64: 1, 1>, scalar_prefetch = 0 : i64, scratch_operands = 1 : i64, tpu.core_type = #tpu.core_type<tc>, window_params = [{transform_indices = @transform_0, window_bounds = array<i64: 16, 128>}, {transform_indices = @transform_1, window_bounds = array<i64: 128, 128>}, {pipeline_mode = #tpu.pipeline_mode<synchronous>, transform_indices = @transform_2, window_bounds = array<i64: 1, 128>}, {transform_indices = @transform_3, window_bounds = array<i64: 16, 128>}, {pipeline_mode = #tpu.pipeline_mode<synchronous>, transform_indices = @transform_4, window_bounds = array<i64: 1, 128>}, {pipeline_mode = #tpu.pipeline_mode<synchronous>, transform_indices = @transform_5, window_bounds = array<i64: 1, 128>}, {transform_indices = @transform_6, window_bounds = array<i64: 16, 128>}]} {
    %c0_i32 = arith.constant 0 : i32
    %0 = arith.cmpi eq, %arg1, %c0_i32 : i32
    %1 = arith.extui %0 : i1 to i32
    %c0_i32_0 = arith.constant 0 : i32
    %2 = arith.cmpi ne, %1, %c0_i32_0 : i32
    scf.if %2 {
      %cst_10 = arith.constant 0.000000e+00 : f32
      %12 = vector.broadcast %cst_10 : f32 to vector<16x128xf32>
      %c0_11 = arith.constant 0 : index
      %c0_12 = arith.constant 0 : index
      %13 = vector.load %arg9[%c0_11, %c0_12] : memref<16x128xf32, #tpu.memory_space<vmem>>, vector<16x128xf32>
      tpu.vector_store %arg9[%c0_11, %c0_12], %12 {strides = array<i32>} : memref<16x128xf32, #tpu.memory_space<vmem>>, vector<16x128xf32>,
    } else {
    }
    %c0 = arith.constant 0 : index
    %c0_1 = arith.constant 0 : index
    %3 = vector.load %arg9[%c0, %c0_1] : memref<16x128xf32, #tpu.memory_space<vmem>>, vector<16x128xf32>
    %c0_2 = arith.constant 0 : index
    %c0_3 = arith.constant 0 : index
    %4 = vector.load %arg2[%c0_2, %c0_3] : memref<16x128xbf16, #tpu.memory_space<vmem>>, vector<16x128xbf16>
    %c0_4 = arith.constant 0 : index
    %c0_5 = arith.constant 0 : index
    %5 = vector.load %arg3[%c0_4, %c0_5] : memref<128x128xbf16, #tpu.memory_space<vmem>>, vector<128x128xbf16>
    %cst = arith.constant dense<0.000000e+00> : vector<16x128xf32>
    %6 = tpu.matmul %4, %5, %cst {dimension_numbers = #tpu.dot_dimension_numbers<[1], [0], [0], [1], [0, 0, 1, 1], [], []>} : vector<16x128xbf16>, vector<128x128xbf16>, vector<16x128xf32> -> vector<16x128xf32>
    %7 = arith.addf %3, %6 : vector<16x128xf32>
    %c0_6 = arith.constant 0 : index
    %c0_7 = arith.constant 0 : index
    %8 = vector.load %arg9[%c0_6, %c0_7] : memref<16x128xf32, #tpu.memory_space<vmem>>, vector<16x128xf32>
    tpu.vector_store %arg9[%c0_6, %c0_7], %7 {strides = array<i32>} : memref<16x128xf32, #tpu.memory_space<vmem>>, vector<16x128xf32>,
    %c0_i32_8 = arith.constant 0 : i32
    %9 = arith.cmpi eq, %arg1, %c0_i32_8 : i32
    %10 = arith.extui %9 : i1 to i32
    %c0_i32_9 = arith.constant 0 : i32
    %11 = arith.cmpi ne, %10, %c0_i32_9 : i32
    scf.if %11 {
      %c0_10 = arith.constant 0 : index
      %c0_11 = arith.constant 0 : index
      %12 = vector.load %arg9[%c0_10, %c0_11] : memref<16x128xf32, #tpu.memory_space<vmem>>, vector<16x128xf32>
      %c0_12 = arith.constant 0 : index
      %c0_13 = arith.constant 0 : index
      %13 = vector.load %arg4[%c0_12, %c0_13] : memref<1x128xf32, #tpu.memory_space<vmem>>, vector<1x128xf32>
      %14 = vector.broadcast %13 : vector<1x128xf32> to vector<16x128xf32>
      %15 = arith.addf %12, %14 : vector<16x128xf32>
      %c0_14 = arith.constant 0 : index
      %c0_15 = arith.constant 0 : index
      %16 = vector.load %arg5[%c0_14, %c0_15] : memref<16x128xbf16, #tpu.memory_space<vmem>>, vector<16x128xbf16>
      %17 = arith.extf %16 : vector<16x128xbf16> to vector<16x128xf32>
      %18 = arith.addf %15, %17 : vector<16x128xf32>
      %cst_16 = arith.constant dense<0.000000e+00> : vector<16xf32>
      %19 = vector.multi_reduction <add>, %18, %cst_16 [1] : vector<16x128xf32> to vector<16xf32>
      %20 = vector.shape_cast %19 : vector<16xf32> to vector<16x1xf32>
      %cst_17 = arith.constant 1.280000e+02 : f32
      %21 = vector.broadcast %cst_17 : f32 to vector<16x1xf32>
      %22 = arith.divf %20, %21 : vector<16x1xf32>
      %23 = vector.broadcast %22 : vector<16x1xf32> to vector<16x128xf32>
      %24 = arith.subf %18, %23 : vector<16x128xf32>
      %25 = arith.mulf %24, %24 : vector<16x128xf32>
      %cst_18 = arith.constant dense<0.000000e+00> : vector<16xf32>
      %26 = vector.multi_reduction <add>, %25, %cst_18 [1] : vector<16x128xf32> to vector<16xf32>
      %27 = vector.shape_cast %26 : vector<16xf32> to vector<16x1xf32>
      %cst_19 = arith.constant 1.280000e+02 : f32
      %28 = vector.broadcast %cst_19 : f32 to vector<16x1xf32>
      %29 = arith.divf %27, %28 : vector<16x1xf32>
      %cst_20 = arith.constant 9.99999996E-13 : f32
      %30 = vector.broadcast %cst_20 : f32 to vector<16x1xf32>
      %31 = arith.addf %29, %30 : vector<16x1xf32>
      %32 = math.rsqrt %31 : vector<16x1xf32>
      %33 = vector.broadcast %32 : vector<16x1xf32> to vector<16x128xf32>
      %34 = arith.mulf %24, %33 : vector<16x128xf32>
      %c0_21 = arith.constant 0 : index
      %c0_22 = arith.constant 0 : index
      %35 = vector.load %arg6[%c0_21, %c0_22] : memref<1x128xf32, #tpu.memory_space<vmem>>, vector<1x128xf32>
      %36 = vector.broadcast %35 : vector<1x128xf32> to vector<16x128xf32>
      %37 = arith.mulf %34, %36 : vector<16x128xf32>
      %c0_23 = arith.constant 0 : index
      %c0_24 = arith.constant 0 : index
      %38 = vector.load %arg7[%c0_23, %c0_24] : memref<1x128xf32, #tpu.memory_space<vmem>>, vector<1x128xf32>
      %39 = vector.broadcast %38 : vector<1x128xf32> to vector<16x128xf32>
      %40 = arith.addf %37, %39 : vector<16x128xf32>
      %41 = arith.truncf %40 : vector<16x128xf32> to vector<16x128xbf16>
      %c0_25 = arith.constant 0 : index
      %c0_26 = arith.constant 0 : index
      %42 = vector.load %arg8[%c0_25, %c0_26] : memref<16x128xbf16, #tpu.memory_space<vmem>>, vector<16x128xbf16>
      tpu.vector_store %arg8[%c0_25, %c0_26], %41 {strides = array<i32>} : memref<16x128xbf16, #tpu.memory_space<vmem>>, vector<16x128xbf16>,
    } else {
    }
    return
  }
  func.func @transform_0(%arg0: i32, %arg1: i32) -> (i32, i32) {
    %c0_i32 = arith.constant 0 : i32
    return %arg0, %arg1 : i32, i32
  }
  func.func @transform_1(%arg0: i32, %arg1: i32) -> (i32, i32) {
    %c0_i32 = arith.constant 0 : i32
    %c0_i32_0 = arith.constant 0 : i32
    return %arg1, %c0_i32 : i32, i32
  }
  func.func @transform_2(%arg0: i32, %arg1: i32) -> (i32, i32) {
    %c0_i32 = arith.constant 0 : i32
    %c0_i32_0 = arith.constant 0 : i32
    %c0_i32_1 = arith.constant 0 : i32
    return %c0_i32, %c0_i32_0 : i32, i32
  }
  func.func @transform_3(%arg0: i32, %arg1: i32) -> (i32, i32) {
    %c0_i32 = arith.constant 0 : i32
    %c0_i32_0 = arith.constant 0 : i32
    return %arg0, %c0_i32 : i32, i32
  }
  func.func @transform_4(%arg0: i32, %arg1: i32) -> (i32, i32) {
    %c0_i32 = arith.constant 0 : i32
    %c0_i32_0 = arith.constant 0 : i32
    %c0_i32_1 = arith.constant 0 : i32
    return %c0_i32, %c0_i32_0 : i32, i32
  }
  func.func @transform_5(%arg0: i32, %arg1: i32) -> (i32, i32) {
    %c0_i32 = arith.constant 0 : i32
    %c0_i32_0 = arith.constant 0 : i32
    %c0_i32_1 = arith.constant 0 : i32
    return %c0_i32, %c0_i32_0 : i32, i32
  }
  func.func @transform_6(%arg0: i32, %arg1: i32) -> (i32, i32) {
    %c0_i32 = arith.constant 0 : i32
    %c0_i32_0 = arith.constant 0 : i32
    return %arg0, %c0_i32 : i32, i32
  }
}

module attributes {stable_mosaic.version = 11 : i64} {
  func.func @_linear_kernel(%arg0: i32, %arg1: i32, %arg2: i32, %arg3: memref<16x128xbf16, #tpu.memory_space<vmem>>, %arg4: memref<128x256xbf16, #tpu.memory_space<vmem>>, %arg5: memref<1x256xf32, #tpu.memory_space<vmem>>, %arg6: memref<16x256xbf16, #tpu.memory_space<vmem>>, %arg7: memref<16x256xf32, #tpu.memory_space<vmem>>) attributes {dimension_semantics = [#tpu.dimension_semantics<parallel>, #tpu.dimension_semantics<parallel>, #tpu.dimension_semantics<arbitrary>], iteration_bounds = array<i64: 1, 1, 1>, scalar_prefetch = 0 : i64, scratch_operands = 1 : i64, tpu.core_type = #tpu.core_type<tc>, window_params = [{transform_indices = @transform_0, window_bounds = array<i64: 16, 128>}, {transform_indices = @transform_1, window_bounds = array<i64: 128, 256>}, {transform_indices = @transform_2, window_bounds = array<i64: 1, 256>}, {transform_indices = @transform_3, window_bounds = array<i64: 16, 256>}]} {
    %c0_i32 = arith.constant 0 : i32
    %0 = arith.cmpi eq, %arg2, %c0_i32 : i32
    %1 = arith.extui %0 : i1 to i32
    %c0_i32_0 = arith.constant 0 : i32
    %2 = arith.cmpi ne, %1, %c0_i32_0 : i32
    scf.if %2 {
      %cst_10 = arith.constant 0.000000e+00 : f32
      %12 = vector.broadcast %cst_10 : f32 to vector<16x256xf32>
      %c0_11 = arith.constant 0 : index
      %c0_12 = arith.constant 0 : index
      %13 = vector.load %arg7[%c0_11, %c0_12] : memref<16x256xf32, #tpu.memory_space<vmem>>, vector<16x256xf32>
      tpu.vector_store %arg7[%c0_11, %c0_12], %12 {strides = array<i32>} : memref<16x256xf32, #tpu.memory_space<vmem>>, vector<16x256xf32>,
    } else {
    }
    %c0 = arith.constant 0 : index
    %c0_1 = arith.constant 0 : index
    %3 = vector.load %arg7[%c0, %c0_1] : memref<16x256xf32, #tpu.memory_space<vmem>>, vector<16x256xf32>
    %c0_2 = arith.constant 0 : index
    %c0_3 = arith.constant 0 : index
    %4 = vector.load %arg3[%c0_2, %c0_3] : memref<16x128xbf16, #tpu.memory_space<vmem>>, vector<16x128xbf16>
    %c0_4 = arith.constant 0 : index
    %c0_5 = arith.constant 0 : index
    %5 = vector.load %arg4[%c0_4, %c0_5] : memref<128x256xbf16, #tpu.memory_space<vmem>>, vector<128x256xbf16>
    %cst = arith.constant dense<0.000000e+00> : vector<16x256xf32>
    %6 = tpu.matmul %4, %5, %cst {dimension_numbers = #tpu.dot_dimension_numbers<[1], [0], [0], [1], [0, 0, 1, 1], [], []>} : vector<16x128xbf16>, vector<128x256xbf16>, vector<16x256xf32> -> vector<16x256xf32>
    %7 = arith.addf %3, %6 : vector<16x256xf32>
    %c0_6 = arith.constant 0 : index
    %c0_7 = arith.constant 0 : index
    %8 = vector.load %arg7[%c0_6, %c0_7] : memref<16x256xf32, #tpu.memory_space<vmem>>, vector<16x256xf32>
    tpu.vector_store %arg7[%c0_6, %c0_7], %7 {strides = array<i32>} : memref<16x256xf32, #tpu.memory_space<vmem>>, vector<16x256xf32>,
    %c0_i32_8 = arith.constant 0 : i32
    %9 = arith.cmpi eq, %arg2, %c0_i32_8 : i32
    %10 = arith.extui %9 : i1 to i32
    %c0_i32_9 = arith.constant 0 : i32
    %11 = arith.cmpi ne, %10, %c0_i32_9 : i32
    scf.if %11 {
      %c0_10 = arith.constant 0 : index
      %c0_11 = arith.constant 0 : index
      %12 = vector.load %arg7[%c0_10, %c0_11] : memref<16x256xf32, #tpu.memory_space<vmem>>, vector<16x256xf32>
      %c0_12 = arith.constant 0 : index
      %c0_13 = arith.constant 0 : index
      %13 = vector.load %arg5[%c0_12, %c0_13] : memref<1x256xf32, #tpu.memory_space<vmem>>, vector<1x256xf32>
      %14 = vector.broadcast %13 : vector<1x256xf32> to vector<16x256xf32>
      %15 = arith.addf %12, %14 : vector<16x256xf32>
      %16 = arith.mulf %15, %15 : vector<16x256xf32>
      %17 = arith.mulf %15, %16 : vector<16x256xf32>
      %cst_14 = arith.constant 4.471500e-02 : f32
      %18 = vector.broadcast %cst_14 : f32 to vector<16x256xf32>
      %19 = arith.mulf %18, %17 : vector<16x256xf32>
      %20 = arith.addf %15, %19 : vector<16x256xf32>
      %cst_15 = arith.constant 0.797884583 : f32
      %21 = vector.broadcast %cst_15 : f32 to vector<16x256xf32>
      %22 = arith.mulf %21, %20 : vector<16x256xf32>
      %23 = math.tanh %22 : vector<16x256xf32>
      %cst_16 = arith.constant 1.000000e+00 : f32
      %24 = vector.broadcast %cst_16 : f32 to vector<16x256xf32>
      %25 = arith.addf %24, %23 : vector<16x256xf32>
      %cst_17 = arith.constant 5.000000e-01 : f32
      %26 = vector.broadcast %cst_17 : f32 to vector<16x256xf32>
      %27 = arith.mulf %26, %25 : vector<16x256xf32>
      %28 = arith.mulf %15, %27 : vector<16x256xf32>
      %29 = arith.truncf %28 : vector<16x256xf32> to vector<16x256xbf16>
      %c0_18 = arith.constant 0 : index
      %c0_19 = arith.constant 0 : index
      %30 = vector.load %arg6[%c0_18, %c0_19] : memref<16x256xbf16, #tpu.memory_space<vmem>>, vector<16x256xbf16>
      tpu.vector_store %arg6[%c0_18, %c0_19], %29 {strides = array<i32>} : memref<16x256xbf16, #tpu.memory_space<vmem>>, vector<16x256xbf16>,
    } else {
    }
    return
  }
  func.func @transform_0(%arg0: i32, %arg1: i32, %arg2: i32) -> (i32, i32) {
    %c0_i32 = arith.constant 0 : i32
    return %arg0, %arg2 : i32, i32
  }
  func.func @transform_1(%arg0: i32, %arg1: i32, %arg2: i32) -> (i32, i32) {
    %c0_i32 = arith.constant 0 : i32
    return %arg2, %arg1 : i32, i32
  }
  func.func @transform_2(%arg0: i32, %arg1: i32, %arg2: i32) -> (i32, i32) {
    %c0_i32 = arith.constant 0 : i32
    %c0_i32_0 = arith.constant 0 : i32
    return %c0_i32, %arg1 : i32, i32
  }
  func.func @transform_3(%arg0: i32, %arg1: i32, %arg2: i32) -> (i32, i32) {
    %c0_i32 = arith.constant 0 : i32
    return %arg0, %arg1 : i32, i32
  }
}

module attributes {stable_mosaic.version = 11 : i64} {
  func.func @_linear_add_ln_kernel(%arg0: i32, %arg1: i32, %arg2: memref<16x256xbf16, #tpu.memory_space<vmem>>, %arg3: memref<256x128xbf16, #tpu.memory_space<vmem>>, %arg4: memref<1x128xf32, #tpu.memory_space<vmem>>, %arg5: memref<16x128xbf16, #tpu.memory_space<vmem>>, %arg6: memref<1x128xf32, #tpu.memory_space<vmem>>, %arg7: memref<1x128xf32, #tpu.memory_space<vmem>>, %arg8: memref<16x128xbf16, #tpu.memory_space<vmem>>, %arg9: memref<16x128xf32, #tpu.memory_space<vmem>>) attributes {dimension_semantics = [#tpu.dimension_semantics<parallel>, #tpu.dimension_semantics<arbitrary>], iteration_bounds = array<i64: 1, 1>, scalar_prefetch = 0 : i64, scratch_operands = 1 : i64, tpu.core_type = #tpu.core_type<tc>, window_params = [{transform_indices = @transform_0, window_bounds = array<i64: 16, 256>}, {transform_indices = @transform_1, window_bounds = array<i64: 256, 128>}, {pipeline_mode = #tpu.pipeline_mode<synchronous>, transform_indices = @transform_2, window_bounds = array<i64: 1, 128>}, {transform_indices = @transform_3, window_bounds = array<i64: 16, 128>}, {pipeline_mode = #tpu.pipeline_mode<synchronous>, transform_indices = @transform_4, window_bounds = array<i64: 1, 128>}, {pipeline_mode = #tpu.pipeline_mode<synchronous>, transform_indices = @transform_5, window_bounds = array<i64: 1, 128>}, {transform_indices = @transform_6, window_bounds = array<i64: 16, 128>}]} {
    %c0_i32 = arith.constant 0 : i32
    %0 = arith.cmpi eq, %arg1, %c0_i32 : i32
    %1 = arith.extui %0 : i1 to i32
    %c0_i32_0 = arith.constant 0 : i32
    %2 = arith.cmpi ne, %1, %c0_i32_0 : i32
    scf.if %2 {
      %cst_10 = arith.constant 0.000000e+00 : f32
      %12 = vector.broadcast %cst_10 : f32 to vector<16x128xf32>
      %c0_11 = arith.constant 0 : index
      %c0_12 = arith.constant 0 : index
      %13 = vector.load %arg9[%c0_11, %c0_12] : memref<16x128xf32, #tpu.memory_space<vmem>>, vector<16x128xf32>
      tpu.vector_store %arg9[%c0_11, %c0_12], %12 {strides = array<i32>} : memref<16x128xf32, #tpu.memory_space<vmem>>, vector<16x128xf32>,
    } else {
    }
    %c0 = arith.constant 0 : index
    %c0_1 = arith.constant 0 : index
    %3 = vector.load %arg9[%c0, %c0_1] : memref<16x128xf32, #tpu.memory_space<vmem>>, vector<16x128xf32>
    %c0_2 = arith.constant 0 : index
    %c0_3 = arith.constant 0 : index
    %4 = vector.load %arg2[%c0_2, %c0_3] : memref<16x256xbf16, #tpu.memory_space<vmem>>, vector<16x256xbf16>
    %c0_4 = arith.constant 0 : index
    %c0_5 = arith.constant 0 : index
    %5 = vector.load %arg3[%c0_4, %c0_5] : memref<256x128xbf16, #tpu.memory_space<vmem>>, vector<256x128xbf16>
    %cst = arith.constant dense<0.000000e+00> : vector<16x128xf32>
    %6 = tpu.matmul %4, %5, %cst {dimension_numbers = #tpu.dot_dimension_numbers<[1], [0], [0], [1], [0, 0, 1, 1], [], []>} : vector<16x256xbf16>, vector<256x128xbf16>, vector<16x128xf32> -> vector<16x128xf32>
    %7 = arith.addf %3, %6 : vector<16x128xf32>
    %c0_6 = arith.constant 0 : index
    %c0_7 = arith.constant 0 : index
    %8 = vector.load %arg9[%c0_6, %c0_7] : memref<16x128xf32, #tpu.memory_space<vmem>>, vector<16x128xf32>
    tpu.vector_store %arg9[%c0_6, %c0_7], %7 {strides = array<i32>} : memref<16x128xf32, #tpu.memory_space<vmem>>, vector<16x128xf32>,
    %c0_i32_8 = arith.constant 0 : i32
    %9 = arith.cmpi eq, %arg1, %c0_i32_8 : i32
    %10 = arith.extui %9 : i1 to i32
    %c0_i32_9 = arith.constant 0 : i32
    %11 = arith.cmpi ne, %10, %c0_i32_9 : i32
    scf.if %11 {
      %c0_10 = arith.constant 0 : index
      %c0_11 = arith.constant 0 : index
      %12 = vector.load %arg9[%c0_10, %c0_11] : memref<16x128xf32, #tpu.memory_space<vmem>>, vector<16x128xf32>
      %c0_12 = arith.constant 0 : index
      %c0_13 = arith.constant 0 : index
      %13 = vector.load %arg4[%c0_12, %c0_13] : memref<1x128xf32, #tpu.memory_space<vmem>>, vector<1x128xf32>
      %14 = vector.broadcast %13 : vector<1x128xf32> to vector<16x128xf32>
      %15 = arith.addf %12, %14 : vector<16x128xf32>
      %c0_14 = arith.constant 0 : index
      %c0_15 = arith.constant 0 : index
      %16 = vector.load %arg5[%c0_14, %c0_15] : memref<16x128xbf16, #tpu.memory_space<vmem>>, vector<16x128xbf16>
      %17 = arith.extf %16 : vector<16x128xbf16> to vector<16x128xf32>
      %18 = arith.addf %15, %17 : vector<16x128xf32>
      %cst_16 = arith.constant dense<0.000000e+00> : vector<16xf32>
      %19 = vector.multi_reduction <add>, %18, %cst_16 [1] : vector<16x128xf32> to vector<16xf32>
      %20 = vector.shape_cast %19 : vector<16xf32> to vector<16x1xf32>
      %cst_17 = arith.constant 1.280000e+02 : f32
      %21 = vector.broadcast %cst_17 : f32 to vector<16x1xf32>
      %22 = arith.divf %20, %21 : vector<16x1xf32>
      %23 = vector.broadcast %22 : vector<16x1xf32> to vector<16x128xf32>
      %24 = arith.subf %18, %23 : vector<16x128xf32>
      %25 = arith.mulf %24, %24 : vector<16x128xf32>
      %cst_18 = arith.constant dense<0.000000e+00> : vector<16xf32>
      %26 = vector.multi_reduction <add>, %25, %cst_18 [1] : vector<16x128xf32> to vector<16xf32>
      %27 = vector.shape_cast %26 : vector<16xf32> to vector<16x1xf32>
      %cst_19 = arith.constant 1.280000e+02 : f32
      %28 = vector.broadcast %cst_19 : f32 to vector<16x1xf32>
      %29 = arith.divf %27, %28 : vector<16x1xf32>
      %cst_20 = arith.constant 9.99999996E-13 : f32
      %30 = vector.broadcast %cst_20 : f32 to vector<16x1xf32>
      %31 = arith.addf %29, %30 : vector<16x1xf32>
      %32 = math.rsqrt %31 : vector<16x1xf32>
      %33 = vector.broadcast %32 : vector<16x1xf32> to vector<16x128xf32>
      %34 = arith.mulf %24, %33 : vector<16x128xf32>
      %c0_21 = arith.constant 0 : index
      %c0_22 = arith.constant 0 : index
      %35 = vector.load %arg6[%c0_21, %c0_22] : memref<1x128xf32, #tpu.memory_space<vmem>>, vector<1x128xf32>
      %36 = vector.broadcast %35 : vector<1x128xf32> to vector<16x128xf32>
      %37 = arith.mulf %34, %36 : vector<16x128xf32>
      %c0_23 = arith.constant 0 : index
      %c0_24 = arith.constant 0 : index
      %38 = vector.load %arg7[%c0_23, %c0_24] : memref<1x128xf32, #tpu.memory_space<vmem>>, vector<1x128xf32>
      %39 = vector.broadcast %38 : vector<1x128xf32> to vector<16x128xf32>
      %40 = arith.addf %37, %39 : vector<16x128xf32>
      %41 = arith.truncf %40 : vector<16x128xf32> to vector<16x128xbf16>
      %c0_25 = arith.constant 0 : index
      %c0_26 = arith.constant 0 : index
      %42 = vector.load %arg8[%c0_25, %c0_26] : memref<16x128xbf16, #tpu.memory_space<vmem>>, vector<16x128xbf16>
      tpu.vector_store %arg8[%c0_25, %c0_26], %41 {strides = array<i32>} : memref<16x128xbf16, #tpu.memory_space<vmem>>, vector<16x128xbf16>,
    } else {
    }
    return
  }
  func.func @transform_0(%arg0: i32, %arg1: i32) -> (i32, i32) {
    %c0_i32 = arith.constant 0 : i32
    return %arg0, %arg1 : i32, i32
  }
  func.func @transform_1(%arg0: i32, %arg1: i32) -> (i32, i32) {
    %c0_i32 = arith.constant 0 : i32
    %c0_i32_0 = arith.constant 0 : i32
    return %arg1, %c0_i32 : i32, i32
  }
  func.func @transform_2(%arg0: i32, %arg1: i32) -> (i32, i32) {
    %c0_i32 = arith.constant 0 : i32
    %c0_i32_0 = arith.constant 0 : i32
    %c0_i32_1 = arith.constant 0 : i32
    return %c0_i32, %c0_i32_0 : i32, i32
  }
  func.func @transform_3(%arg0: i32, %arg1: i32) -> (i32, i32) {
    %c0_i32 = arith.constant 0 : i32
    %c0_i32_0 = arith.constant 0 : i32
    return %arg0, %c0_i32 : i32, i32
  }
  func.func @transform_4(%arg0: i32, %arg1: i32) -> (i32, i32) {
    %c0_i32 = arith.constant 0 : i32
    %c0_i32_0 = arith.constant 0 : i32
    %c0_i32_1 = arith.constant 0 : i32
    return %c0_i32, %c0_i32_0 : i32, i32
  }
  func.func @transform_5(%arg0: i32, %arg1: i32) -> (i32, i32) {
    %c0_i32 = arith.constant 0 : i32
    %c0_i32_0 = arith.constant 0 : i32
    %c0_i32_1 = arith.constant 0 : i32
    return %c0_i32, %c0_i32_0 : i32, i32
  }
  func.func @transform_6(%arg0: i32, %arg1: i32) -> (i32, i32) {
    %c0_i32 = arith.constant 0 : i32
    %c0_i32_0 = arith.constant 0 : i32
    return %arg0, %c0_i32 : i32, i32
  }
}

module attributes {stable_mosaic.version = 11 : i64} {
  func.func @_linear_kernel(%arg0: i32, %arg1: i32, %arg2: i32, %arg3: memref<2x128xbf16, #tpu.memory_space<vmem>>, %arg4: memref<128x128xbf16, #tpu.memory_space<vmem>>, %arg5: memref<1x128xf32, #tpu.memory_space<vmem>>, %arg6: memref<2x128xbf16, #tpu.memory_space<vmem>>, %arg7: memref<2x128xf32, #tpu.memory_space<vmem>>) attributes {dimension_semantics = [#tpu.dimension_semantics<parallel>, #tpu.dimension_semantics<parallel>, #tpu.dimension_semantics<arbitrary>], iteration_bounds = array<i64: 1, 1, 1>, scalar_prefetch = 0 : i64, scratch_operands = 1 : i64, tpu.core_type = #tpu.core_type<tc>, window_params = [{transform_indices = @transform_0, window_bounds = array<i64: 2, 128>}, {transform_indices = @transform_1, window_bounds = array<i64: 128, 128>}, {transform_indices = @transform_2, window_bounds = array<i64: 1, 128>}, {transform_indices = @transform_3, window_bounds = array<i64: 2, 128>}]} {
    %c0_i32 = arith.constant 0 : i32
    %0 = arith.cmpi eq, %arg2, %c0_i32 : i32
    %1 = arith.extui %0 : i1 to i32
    %c0_i32_0 = arith.constant 0 : i32
    %2 = arith.cmpi ne, %1, %c0_i32_0 : i32
    scf.if %2 {
      %cst_10 = arith.constant 0.000000e+00 : f32
      %12 = vector.broadcast %cst_10 : f32 to vector<2x128xf32>
      %c0_11 = arith.constant 0 : index
      %c0_12 = arith.constant 0 : index
      %13 = vector.load %arg7[%c0_11, %c0_12] : memref<2x128xf32, #tpu.memory_space<vmem>>, vector<2x128xf32>
      tpu.vector_store %arg7[%c0_11, %c0_12], %12 {strides = array<i32>} : memref<2x128xf32, #tpu.memory_space<vmem>>, vector<2x128xf32>,
    } else {
    }
    %c0 = arith.constant 0 : index
    %c0_1 = arith.constant 0 : index
    %3 = vector.load %arg7[%c0, %c0_1] : memref<2x128xf32, #tpu.memory_space<vmem>>, vector<2x128xf32>
    %c0_2 = arith.constant 0 : index
    %c0_3 = arith.constant 0 : index
    %4 = vector.load %arg3[%c0_2, %c0_3] : memref<2x128xbf16, #tpu.memory_space<vmem>>, vector<2x128xbf16>
    %c0_4 = arith.constant 0 : index
    %c0_5 = arith.constant 0 : index
    %5 = vector.load %arg4[%c0_4, %c0_5] : memref<128x128xbf16, #tpu.memory_space<vmem>>, vector<128x128xbf16>
    %cst = arith.constant dense<0.000000e+00> : vector<2x128xf32>
    %6 = tpu.matmul %4, %5, %cst {dimension_numbers = #tpu.dot_dimension_numbers<[1], [0], [0], [1], [0, 0, 1, 1], [], []>} : vector<2x128xbf16>, vector<128x128xbf16>, vector<2x128xf32> -> vector<2x128xf32>
    %7 = arith.addf %3, %6 : vector<2x128xf32>
    %c0_6 = arith.constant 0 : index
    %c0_7 = arith.constant 0 : index
    %8 = vector.load %arg7[%c0_6, %c0_7] : memref<2x128xf32, #tpu.memory_space<vmem>>, vector<2x128xf32>
    tpu.vector_store %arg7[%c0_6, %c0_7], %7 {strides = array<i32>} : memref<2x128xf32, #tpu.memory_space<vmem>>, vector<2x128xf32>,
    %c0_i32_8 = arith.constant 0 : i32
    %9 = arith.cmpi eq, %arg2, %c0_i32_8 : i32
    %10 = arith.extui %9 : i1 to i32
    %c0_i32_9 = arith.constant 0 : i32
    %11 = arith.cmpi ne, %10, %c0_i32_9 : i32
    scf.if %11 {
      %c0_10 = arith.constant 0 : index
      %c0_11 = arith.constant 0 : index
      %12 = vector.load %arg7[%c0_10, %c0_11] : memref<2x128xf32, #tpu.memory_space<vmem>>, vector<2x128xf32>
      %c0_12 = arith.constant 0 : index
      %c0_13 = arith.constant 0 : index
      %13 = vector.load %arg5[%c0_12, %c0_13] : memref<1x128xf32, #tpu.memory_space<vmem>>, vector<1x128xf32>
      %14 = vector.broadcast %13 : vector<1x128xf32> to vector<2x128xf32>
      %15 = arith.addf %12, %14 : vector<2x128xf32>
      %16 = math.tanh %15 : vector<2x128xf32>
      %17 = arith.truncf %16 : vector<2x128xf32> to vector<2x128xbf16>
      %c0_14 = arith.constant 0 : index
      %c0_15 = arith.constant 0 : index
      %18 = vector.load %arg6[%c0_14, %c0_15] : memref<2x128xbf16, #tpu.memory_space<vmem>>, vector<2x128xbf16>
      tpu.vector_store %arg6[%c0_14, %c0_15], %17 {strides = array<i32>} : memref<2x128xbf16, #tpu.memory_space<vmem>>, vector<2x128xbf16>,
    } else {
    }
    return
  }
  func.func @transform_0(%arg0: i32, %arg1: i32, %arg2: i32) -> (i32, i32) {
    %c0_i32 = arith.constant 0 : i32
    return %arg0, %arg2 : i32, i32
  }
  func.func @transform_1(%arg0: i32, %arg1: i32, %arg2: i32) -> (i32, i32) {
    %c0_i32 = arith.constant 0 : i32
    return %arg2, %arg1 : i32, i32
  }
  func.func @transform_2(%arg0: i32, %arg1: i32, %arg2: i32) -> (i32, i32) {
    %c0_i32 = arith.constant 0 : i32
    %c0_i32_0 = arith.constant 0 : i32
    return %c0_i32, %arg1 : i32, i32
  }
  func.func @transform_3(%arg0: i32, %arg1: i32, %arg2: i32) -> (i32, i32) {
    %c0_i32 = arith.constant 0 : i32
    return %arg0, %arg1 : i32, i32
  }
}

module attributes {stable_mosaic.version = 11 : i64} {
  func.func @_linear_kernel(%arg0: i32, %arg1: i32, %arg2: i32, %arg3: memref<2x128xbf16, #tpu.memory_space<vmem>>, %arg4: memref<128x8xbf16, #tpu.memory_space<vmem>>, %arg5: memref<1x8xf32, #tpu.memory_space<vmem>>, %arg6: memref<2x8xf32, #tpu.memory_space<vmem>>, %arg7: memref<2x8xf32, #tpu.memory_space<vmem>>) attributes {dimension_semantics = [#tpu.dimension_semantics<parallel>, #tpu.dimension_semantics<parallel>, #tpu.dimension_semantics<arbitrary>], iteration_bounds = array<i64: 1, 1, 1>, scalar_prefetch = 0 : i64, scratch_operands = 1 : i64, tpu.core_type = #tpu.core_type<tc>, window_params = [{transform_indices = @transform_0, window_bounds = array<i64: 2, 128>}, {transform_indices = @transform_1, window_bounds = array<i64: 128, 8>}, {transform_indices = @transform_2, window_bounds = array<i64: 1, 8>}, {transform_indices = @transform_3, window_bounds = array<i64: 2, 8>}]} {
    %c0_i32 = arith.constant 0 : i32
    %0 = arith.cmpi eq, %arg2, %c0_i32 : i32
    %1 = arith.extui %0 : i1 to i32
    %c0_i32_0 = arith.constant 0 : i32
    %2 = arith.cmpi ne, %1, %c0_i32_0 : i32
    scf.if %2 {
      %cst_10 = arith.constant 0.000000e+00 : f32
      %12 = vector.broadcast %cst_10 : f32 to vector<2x8xf32>
      %c0_11 = arith.constant 0 : index
      %c0_12 = arith.constant 0 : index
      %13 = vector.load %arg7[%c0_11, %c0_12] : memref<2x8xf32, #tpu.memory_space<vmem>>, vector<2x8xf32>
      tpu.vector_store %arg7[%c0_11, %c0_12], %12 {strides = array<i32>} : memref<2x8xf32, #tpu.memory_space<vmem>>, vector<2x8xf32>,
    } else {
    }
    %c0 = arith.constant 0 : index
    %c0_1 = arith.constant 0 : index
    %3 = vector.load %arg7[%c0, %c0_1] : memref<2x8xf32, #tpu.memory_space<vmem>>, vector<2x8xf32>
    %c0_2 = arith.constant 0 : index
    %c0_3 = arith.constant 0 : index
    %4 = vector.load %arg3[%c0_2, %c0_3] : memref<2x128xbf16, #tpu.memory_space<vmem>>, vector<2x128xbf16>
    %c0_4 = arith.constant 0 : index
    %c0_5 = arith.constant 0 : index
    %5 = vector.load %arg4[%c0_4, %c0_5] : memref<128x8xbf16, #tpu.memory_space<vmem>>, vector<128x8xbf16>
    %cst = arith.constant dense<0.000000e+00> : vector<2x8xf32>
    %6 = tpu.matmul %4, %5, %cst {dimension_numbers = #tpu.dot_dimension_numbers<[1], [0], [0], [1], [0, 0, 1, 1], [], []>} : vector<2x128xbf16>, vector<128x8xbf16>, vector<2x8xf32> -> vector<2x8xf32>
    %7 = arith.addf %3, %6 : vector<2x8xf32>
    %c0_6 = arith.constant 0 : index
    %c0_7 = arith.constant 0 : index
    %8 = vector.load %arg7[%c0_6, %c0_7] : memref<2x8xf32, #tpu.memory_space<vmem>>, vector<2x8xf32>
    tpu.vector_store %arg7[%c0_6, %c0_7], %7 {strides = array<i32>} : memref<2x8xf32, #tpu.memory_space<vmem>>, vector<2x8xf32>,
    %c0_i32_8 = arith.constant 0 : i32
    %9 = arith.cmpi eq, %arg2, %c0_i32_8 : i32
    %10 = arith.extui %9 : i1 to i32
    %c0_i32_9 = arith.constant 0 : i32
    %11 = arith.cmpi ne, %10, %c0_i32_9 : i32
    scf.if %11 {
      %c0_10 = arith.constant 0 : index
      %c0_11 = arith.constant 0 : index
      %12 = vector.load %arg7[%c0_10, %c0_11] : memref<2x8xf32, #tpu.memory_space<vmem>>, vector<2x8xf32>
      %c0_12 = arith.constant 0 : index
      %c0_13 = arith.constant 0 : index
      %13 = vector.load %arg5[%c0_12, %c0_13] : memref<1x8xf32, #tpu.memory_space<vmem>>, vector<1x8xf32>
      %14 = vector.broadcast %13 : vector<1x8xf32> to vector<2x8xf32>
      %15 = arith.addf %12, %14 : vector<2x8xf32>
      %16 = arith.negf %15 : vector<2x8xf32>
      %17 = math.exp %16 : vector<2x8xf32>
      %cst_14 = arith.constant 1.000000e+00 : f32
      %18 = vector.broadcast %cst_14 : f32 to vector<2x8xf32>
      %19 = arith.addf %18, %17 : vector<2x8xf32>
      %20 = arith.divf %18, %19 : vector<2x8xf32>
      %c0_15 = arith.constant 0 : index
      %c0_16 = arith.constant 0 : index
      %21 = vector.load %arg6[%c0_15, %c0_16] : memref<2x8xf32, #tpu.memory_space<vmem>>, vector<2x8xf32>
      tpu.vector_store %arg6[%c0_15, %c0_16], %20 {strides = array<i32>} : memref<2x8xf32, #tpu.memory_space<vmem>>, vector<2x8xf32>,
    } else {
    }
    return
  }
  func.func @transform_0(%arg0: i32, %arg1: i32, %arg2: i32) -> (i32, i32) {
    %c0_i32 = arith.constant 0 : i32
    return %arg0, %arg2 : i32, i32
  }
  func.func @transform_1(%arg0: i32, %arg1: i32, %arg2: i32) -> (i32, i32) {
    %c0_i32 = arith.constant 0 : i32
    return %arg2, %arg1 : i32, i32
  }
  func.func @transform_2(%arg0: i32, %arg1: i32, %arg2: i32) -> (i32, i32) {
    %c0_i32 = arith.constant 0 : i32
    %c0_i32_0 = arith.constant 0 : i32
    return %c0_i32, %arg1 : i32, i32
  }
  func.func @transform_3(%arg0: i32, %arg1: i32, %arg2: i32) -> (i32, i32) {
    %c0_i32 = arith.constant 0 : i32
    return %arg0, %arg1 : i32, i32
  }
}

</mosaic_0001>

<bundles_post_ra>
// kernel: _lambda_.13
= control target key start
LH: loop header
LB: loop body
LE: loop exit
PB: predicated region body
PF: predicated region fallthrough
CT: control target
= control target key end

     0   :  { %s492_s18 = smov 0   ;;  %s494_s19 = smov 0   ;;  %s540_s0 = inlined_call_operand.vmem [shape: bf16[2,8,128], index: 0, kind: input, shape index: {}]   ;;  %s541_s1 = inlined_call_operand.vmem [shape: bf16[8,128], index: 1, kind: input, shape index: {}]   ;;  %s542_s2 = inlined_call_operand.vmem [shape: bf16[1,128], index: 2, kind: input, shape index: {}]   ;;  %s543_s3 = inlined_call_operand.vmem [shape: f32[1,128], index: 3, kind: input, shape index: {}]   ;;  %s544_s4 = inlined_call_operand.vmem [shape: f32[1,128], index: 4, kind: input, shape index: {}]   ;;  %s545_s5 = inlined_call_operand.vmem [shape: bf16[2,8,128], index: 5, kind: output, shape index: {}]  }
   0x1   :  { %s496_s20 = smov 0  }
   0x2 LB: > { %s27_s21 = sadd.s32 1, %s456_s19  ;;  %p405_p0 = scmp.ge.s32.totalorder %s460_s20, 1  ;;  %s460_s20 = sphi %s496_s20, %s15_s20   ;;  %s456_s19 = sphi %s494_s19, %s547_s19   ;;  %s452_s18 = sphi %s492_s18, %s546_s18  }
   0x3   : > { %p29_p1 = scmp.ge.s32.totalorder %s27_s21, 2  ;;  %p214_p2 = scmp.lt.s32.totalorder %s460_s20, 3 }
   0x5   : > { %s549_s21 = smov (%p29_p1, %s27_s21), 0  ;;  %p215_p3 = pnand %p405_p0, %p214_p2 }
   0x6   : > { %p250_p4 = scmp.lt.s32.totalorder (!%p215_p3), %s452_s18, 1  ;;  %v273_v0 = vld [vmem:[%s542_s2] sm:$0x1] (!%p215_p3)  ;;  %v275_v1 = vlaneseq (!%p215_p3) }
   0x7   : > { %218 = sbr.rel (%p215_p3) target bundleno = 338 (0x152), region = 40  ;;  %v270_v2 = vld [vmem:[%s541_s1] sm:$0xf] (!%p215_p3)  ;;  %v274_v4 = vunpack.c.l.bf16 (!%p215_p3), %v273_v0 }
   0x8   : > { %v276_v3 = vshrl.u32 (!%p215_p3), %v275_v1, 7  ;;  %v271_v6 = vunpack.c.l.bf16 (!%p215_p3), %v270_v2  ;;  %v408_v20 = vld [vmem:[%s543_s3] ss:$0 sm:$0xff] (!%p215_p3) }
   0x9   : > { %v409_v22 = vld [vmem:[%s544_s4] ss:$0 sm:$0xff] (!%p215_p3) }
   0xa   : > { %v277_v5 = vsub.s32 (!%p215_p3), 0, %v276_v3 }
   0xc   : > { %v278_v9 = vrot.slane (!%p215_p3), %v274_v4, %v277_v5 }
   0xe   : > { %s551_s18 = smov (!%p250_p4, %s452_s18), 1 }
   0xf   : > { %s406_s26 = sshll.u32 %s551_s18, 2 }
  0x10   : > { %s256_s29 = scalar_lea.vmem %s540_s0, %s406_s26  ;;  %s267_s11 = scalar_lea.vmem %s545_s5, %s406_s26 }
  0x11   : > { %v268_v7 = vld [vmem:[%s256_s29] sm:$0xf] }
  0x12   : > { %v269_v8 = vunpack.c.l.bf16 %v268_v7 }
  0x14   : > { %v272_v10 = vadd.f32 %v271_v6, %v269_v8 }
  0x16   : > { %v279_v11 = vadd.f32 %v278_v9, %v272_v10 }
  0x18   : > { %280 = vadd.xlane.f32.xlu0 %v279_v11 }
  0xa5   : > { %v281_v12 = vpop.xlane.xlu0 %280 }
  0xa6   : > { %v283_v13 = vmul.f32 0.0078125, %v281_v12 }
  0xa8   : > { %v284_v14 = vsub.f32 %v279_v11, %v283_v13 }
  0xaa   : > { %v285_v15 = vmul.f32 %v284_v14, %v284_v14 }
  0xac   : > { %286 = vadd.xlane.f32.xlu0 %v285_v15 }
 0x139   : > { %v287_v16 = vpop.xlane.xlu0 %286 }
 0x13a   : > { %v288_v17 = vmul.f32 0.0078125, %v287_v16 }
 0x13c   : > { %v289_v18 = vadd.f32 1e-12, %v288_v17 }
 0x13e   : > { %436 = vrsqrt.f32 %v289_v18 }
 0x148   : > { %v437_v19 = vpop.eup %436 }
 0x149   : > { %v291_v21 = vmul.f32 %v437_v19, %v284_v14 }
 0x14b   : > { %v299_v23 = vmul.f32 %v408_v20, %v291_v21 }
 0x14d   : > { %v307_v24 = vadd.f32 %v409_v22, %v299_v23 }
 0x14f   : > { %v308_v25 = vpack.c.bf16 %v307_v24, %v307_v24 }
 0x151   : > { %309 = vst [vmem:[%s267_s11] sm:$0xf] %v308_v25 }
 0x152 PF: > { %s15_s20 = sadd.s32 1, %s460_s20   ;;  %s546_s18 = smov %s456_s19 }
 0x153   : > { %p12_p5 = scmp.ge.s32.totalorder %s15_s20, 4   ;;  %s547_s19 = smov %s549_s21 }
 0x155   :  { %14 = sbr.rel (!%p12_p5) target bundleno = 2 (0x2), region = 73 }

// kernel: _lambda_.16
= control target key start
LH: loop header
LB: loop body
LE: loop exit
PB: predicated region body
PF: predicated region fallthrough
CT: control target
= control target key end

     0   :  { %v293_v0 = vmov 0.0   ;;  %vm294_vm0 = vmmov 0   ;;  %s372_s1 = inlined_call_operand.vmem [shape: bf16[128,128], index: 1, kind: input, shape index: {}]   ;;  %s373_s0 = inlined_call_operand.vmem [shape: bf16[16,128], index: 0, kind: input, shape index: {}]   ;;  %s374_s3 = inlined_call_operand.vmem [shape: bf16[16,128], index: 3, kind: input, shape index: {}]   ;;  %s375_s2 = inlined_call_operand.vmem [shape: f32[1,128], index: 2, kind: input, shape index: {}]   ;;  %s376_s4 = inlined_call_operand.vmem [shape: f32[1,128], index: 4, kind: input, shape index: {}]   ;;  %s377_s5 = inlined_call_operand.vmem [shape: f32[1,128], index: 5, kind: input, shape index: {}]   ;;  %s378_s6 = inlined_call_operand.vmem [shape: bf16[16,128], index: 6, kind: output, shape index: {}]  }
   0x1   :  { %258 = vmatprep.subr.bf16.mxu0 %v293_v0  ;;  %v280_v1 = vld [vmem:[%s372_s1] sm:$0xff]   ;;  %274 = vmatprep.mubr.msk.bf16.mxu0 %vm294_vm0, %v293_v0  ;;  %v281_v2 = vld [vmem:[%s372_s1 + $0x8] sm:$0xff]   ;;  %v282_v3 = vld [vmem:[%s372_s1 + $0x10] sm:$0xff]  }
   0x2   :  { %259 = vmatpush3.bf16.msra.mxu0 %v280_v1  ;;  %v283_v4 = vld [vmem:[%s372_s1 + $0x18] sm:$0xff]   ;;  %v284_v5 = vld [vmem:[%s372_s1 + $0x20] sm:$0xff]   ;;  %v285_v6 = vld [vmem:[%s372_s1 + $0x28] sm:$0xff]  }
   0x3   :  { %260 = vmatprep.subr.bf16.mxu0 %v293_v0  ;;  %v286_v7 = vld [vmem:[%s372_s1 + $0x30] sm:$0xff]   ;;  %v287_v8 = vld [vmem:[%s372_s1 + $0x38] sm:$0xff]   ;;  %v288_v9 = vld [vmem:[%s373_s0] sm:$0xff]  }
   0x4   :  { %v241_v10 = vld [vmem:[%s374_s3] sm:$0xff]  }
   0x5   :  { %v233_v11 = vld [vmem:[%s375_s2] ss:$0 sm:$0xff]  ;;  %v242_v12 = vunpack.c.l.bf16 %v241_v10  ;;  %v243_v20 = vunpack.c.h.bf16 %v241_v10 }
   0x6   :  { %261 = vmatpush3.bf16.msra.mxu0 %v281_v2  ;;  %v234_v38 = vld [vmem:[%s376_s4] ss:$0 sm:$0xff] }
   0x7   :  { %262 = vmatprep.subr.bf16.mxu0 %v293_v0  ;;  %v235_v42 = vld [vmem:[%s377_s5] ss:$0 sm:$0xff] }
   0xa   :  { %263 = vmatpush3.bf16.msra.mxu0 %v282_v3 }
   0xb   :  { %264 = vmatprep.subr.bf16.mxu0 %v293_v0 }
   0xe   :  { %265 = vmatpush3.bf16.msra.mxu0 %v283_v4 }
   0xf   :  { %266 = vmatprep.subr.bf16.mxu0 %v293_v0 }
  0x12   :  { %267 = vmatpush3.bf16.msra.mxu0 %v284_v5 }
  0x13   :  { %268 = vmatprep.subr.bf16.mxu0 %v293_v0 }
  0x16   :  { %269 = vmatpush3.bf16.msra.mxu0 %v285_v6 }
  0x17   :  { %270 = vmatprep.subr.bf16.mxu0 %v293_v0 }
  0x1a   :  { %271 = vmatpush3.bf16.msra.mxu0 %v286_v7 }
  0x1b   :  { %272 = vmatprep.subr.bf16.mxu0 %v293_v0 }
  0x1e   :  { %273 = vmatpush3.bf16.msra.mxu0 %v287_v8 }
  0x21   :  { %275 = vmatmul.mubr.bf16.vlgmr.msra.gmra.mrb[0].mxu0 %v288_v9 }
  0xf4   :  { %v138_v13 = vpop.f32.mrb[0].mxu0 }
  0xf5   :  { %v161_v14 = vadd.f32 %v233_v11, %v138_v13  ;;  %v276_v15 = vpop.f32.mrb[1].mxu0 }
  0xf6   :  { %v141_v16 = vpop.f32.mrb[2].mxu0 }
  0xf7   :  { %v162_v17 = vadd.f32 %v233_v11, %v141_v16  ;;  %v277_v18 = vpop.f32.mrb[3].mxu0  ;;  %v167_v19 = vadd.f32 %v242_v12, %v161_v14 }
  0xf9   :  { %169 = vadd.xlane.f32.xlu0 %v167_v19  ;;  %v168_v21 = vadd.f32 %v243_v20, %v162_v17 }
  0xfd   :  { %171 = vadd.xlane.f32.xlu0 %v168_v21 }
 0x186   :  { %v170_v22 = vpop.xlane.xlu0 %169 }
 0x187   :  { %v174_v23 = vmul.f32 0.0078125, %v170_v22 }
 0x189   :  { %v176_v24 = vsub.f32 %v167_v19, %v174_v23 }
 0x18a   :  { %v172_v25 = vpop.xlane.xlu0 %171 }
 0x18b   :  { %v175_v26 = vmul.f32 0.0078125, %v172_v25  ;;  %v178_v27 = vmul.f32 %v176_v24, %v176_v24 }
 0x18d   :  { %v177_v28 = vsub.f32 %v168_v21, %v175_v26  ;;  %180 = vadd.xlane.f32.xlu1 %v178_v27 }
 0x18f   :  { %v179_v29 = vmul.f32 %v177_v28, %v177_v28 }
 0x191   :  { %182 = vadd.xlane.f32.xlu1 %v179_v29 }
 0x21a   :  { %v181_v30 = vpop.xlane.xlu1 %180 }
 0x21b   :  { %v184_v31 = vmul.f32 0.0078125, %v181_v30 }
 0x21d   :  { %v186_v32 = vadd.f32 1e-12, %v184_v31 }
 0x21e   :  { %v183_v33 = vpop.xlane.xlu1 %182 }
 0x21f   :  { %289 = vrsqrt.f32 %v186_v32  ;;  %v185_v34 = vmul.f32 0.0078125, %v183_v33 }
 0x221   :  { %v187_v35 = vadd.f32 1e-12, %v185_v34 }
 0x223   :  { %291 = vrsqrt.f32 %v187_v35 }
 0x229   :  { %v290_v36 = vpop.eup %289 }
 0x22a   :  { %v190_v37 = vmul.f32 %v290_v36, %v176_v24 }
 0x22c   :  { %v199_v40 = vmul.f32 %v234_v38, %v190_v37 }
 0x22d   :  { %v292_v39 = vpop.eup %291 }
 0x22e   :  { %v191_v41 = vmul.f32 %v292_v39, %v177_v28  ;;  %v208_v44 = vadd.f32 %v235_v42, %v199_v40 }
 0x230   :  { %v200_v43 = vmul.f32 %v234_v38, %v191_v41 }
 0x232   :  { %v209_v45 = vadd.f32 %v235_v42, %v200_v43 }
 0x234   :  { %v247_v46 = vpack.c.bf16 %v209_v45, %v208_v44 }
 0x236   :  { %248 = vst [vmem:[%s378_s6] sm:$0xff] %v247_v46  }

// kernel: _lambda_.15
= control target key start
LH: loop header
LB: loop body
LE: loop exit
PB: predicated region body
PF: predicated region fallthrough
CT: control target
= control target key end

     0   :  { %s883_s15 = smov 0   ;;  %s885_s16 = smov 0   ;;  %s956_s0 = inlined_call_operand.vmem [shape: bf16[2,8,384], index: 0, kind: input, shape index: {}, may-alias: {0,1,2}]   ;;  %s957_s1 = inlined_call_operand.vmem [shape: bf16[2,8,384], index: 1, kind: input, shape index: {}, may-alias: {0,1,2}]   ;;  %s958_s2 = inlined_call_operand.vmem [shape: bf16[2,8,384], index: 2, kind: input, shape index: {}, may-alias: {0,1,2}]   ;;  %s959_s3 = inlined_call_operand.vmem [shape: f32[2,1,8], index: 3, kind: input, shape index: {}]   ;;  %s960_s4 = inlined_call_operand.vmem [shape: bf16[2,8,128], index: 4, kind: output, shape index: {}]  }
   0x1   :  { %s887_s17 = smov 0  }
   0x2 LB: > { %s33_s18 = sadd.s32 1, %s849_s16  ;;  %p739_p0 = scmp.ge.s32.totalorder %s853_s17, 1  ;;  %s853_s17 = sphi %s887_s17, %s14_s17   ;;  %s849_s16 = sphi %s885_s16, %s962_s16   ;;  %s845_s15 = sphi %s883_s15, %s961_s15  }
   0x3   : > { %p35_p1 = scmp.ge.s32.totalorder %s33_s18, 2  ;;  %p242_p2 = scmp.lt.s32.totalorder %s853_s17, 3 }
   0x5   : > { %s964_s18 = smov (%p35_p1, %s33_s18), 0  ;;  %p243_p3 = pnand %p739_p0, %p242_p2 }
   0x6   : > { %p301_p4 = scmp.lt.s32.totalorder (!%p243_p3), %s845_s15, 1  ;;  %v855_v0 = vmov (!%p243_p3), 0.0   ;;  %vm856_vm0 = vmmov (!%p243_p3), 0   ;;  %vm351_vm1 = vcmask (!%p243_p3), 523264   ;;  %vm406_vm2 = vcmask (!%p243_p3), 64512   ;;  %s857_s30 = smov (!%p243_p3), 64  }
   0x7   : > { %246 = sbr.rel (%p243_p3) target bundleno = 1431 (0x597), region = 36  ;;  %766 = vmatprep.subr.bf16.mxu0 (!%p243_p3), %v855_v0  ;;  %768 = vmatprep.mubr.msk.bf16.mxu0 (!%p243_p3), %vm856_vm0, %v855_v0  ;;  %vm422_vm3 = vcmask (!%p243_p3), 1043456  }
   0x8   : > { %772 = vmatprep.subr.bf16.mxu1 (!%p243_p3), %v855_v0  ;;  %774 = vmatprep.mubr.msk.bf16.mxu1 (!%p243_p3), %vm856_vm0, %v855_v0 }
   0xe   : > { %s966_s15 = smov (!%p301_p4, %s845_s15), 1 }
   0xf   : > { %s906_s19 = smul.u32 12, %s966_s15  ;;  %s335_s29 = scalar_lea.vmem %s959_s3, %s966_s15 }
  0x10   : > { %v745_v5 = vld [vmem:[%s335_s29] ss:$0 sm:$0xff]  ;;  %s743_s9 = sshll.u32 %s966_s15, 2 }
  0x11   : > { %s755_s20 = sadd.s32 4, %s906_s19  ;;  %s312_s26 = scalar_lea.vmem %s956_s0, %s906_s19 }
  0x12   : > { %s321_s23 = scalar_lea.vmem %s957_s1, %s755_s20  ;;  %v348_v3 = vld [vmem:[%s312_s26] sm:$0xf]  ;;  %s757_s5 = sadd.s32 8, %s906_s19 }
  0x13   : > { %v349_v1 = vld [vmem:[%s321_s23] sm:$0xf]  ;;  %v747_v13 = vcombine.low %v348_v3, %v348_v3  ;;  %s331_s8 = scalar_lea.vmem %s958_s2, %s757_s5  ;;  %s345_s12 = scalar_lea.vmem %s960_s4, %s743_s9 }
  0x14   : > { %v356_v2 = vsel %vm351_vm1, %v349_v1, 0  ;;  %v748_v12 = vcombine.low %v349_v1, %v349_v1  ;;  %v350_v19 = vld [vmem:[%s331_s8] sm:$0xf] }
  0x15   : > { %767 = vmatpush3.bf16.xpose.msra.mxu0 %v356_v2  ;;  %v424_v20 = vsel %vm422_vm3, %v350_v19, 0  ;;  %v750_v39 = vcombine.low %v350_v19, %v350_v19 }
  0x16   : > { %784 = vmatprep.subr.bf16.mxu0 %v855_v0  ;;  %474 = vrot.lane.b32.xlu1 %v748_v12, %s857_s30 }
  0x17   : > { %773 = vmatpush3.bf16.msra.mxu1 %v424_v20 }
  0x18   : > { %778 = vmatprep.subr.bf16.mxu1 %v855_v0 }
  0x1a   : > { %469 = vrot.lane.b32.xlu1 %v747_v13, %s857_s30 }
  0x1c   : > { %769 = vmatmul.mubr.msk.bf16.vlgmr.msra.gmra.mrb[0].mxu0 %vm351_vm1, %v348_v3 }
  0x1d   : > { %786 = vmatprep.mubr.msk.bf16.mxu0 %vm856_vm0, %v855_v0 }
  0x88   : > { %v475_v23 = vpop.permute.xlu1 %474 }
  0x89   : > { %v480_v25 = vsel %vm351_vm1, %v475_v23, 0 }
  0x8c   : > { %v470_v27 = vpop.permute.xlu1 %469 }
  0xef   : > { %v392_v4 = vpop.f32.mrb[0].mxu0 }
  0xf0   : > { %v398_v6 = vmul.f32 0.125, %v392_v4  ;;  %v770_v7 = vpop.f32.mrb[1].mxu0 }
  0xf1   : > { %v395_v8 = vpop.f32.mrb[2].mxu0 }
  0xf2   : > { %v771_v9 = vpop.f32.mrb[3].mxu0  ;;  %v405_v10 = vadd.f32 %v745_v5, %v398_v6 }
  0xf4   : > { %v407_v11 = vsel %vm406_vm2, %v405_v10, -inf }
  0xf5   : > { %408 = vmax.xlane.f32.xlu0 %v407_v11 }
 0x182   : > { %v409_v14 = vpop.xlane.xlu0 %408 }
 0x183   : > { %v410_v15 = vsub.f32 %v405_v10, %v409_v14 }
 0x185   : > { %v411_v16 = vmul.f32 1.442695, %v410_v15 }
 0x187   : > { %823 = vpow2.f32 %v411_v16 }
 0x191   : > { %v824_v17 = vpop.eup %823 }
 0x192   : > { %v413_v18 = vsel %vm406_vm2, %v824_v17, 0.0 }
 0x193   : > { %414 = vadd.xlane.f32.xlu0 %v413_v18 }
 0x220   : > { %v415_v21 = vpop.xlane.xlu0 %414 }
 0x221   : > { %825 = vrcp.f32 %v415_v21 }
 0x22b   : > { %v826_v22 = vpop.eup %825 }
 0x22c   : > { %v417_v24 = vmul.f32 %v826_v22, %v824_v17 }
 0x22e   : > { %v418_v26 = vpack.c.bf16 %v417_v24, %v417_v24 }
 0x230   : > { %775 = vmatmul.mubr.msk.bf16.vlgmr.msra.gmra.mrb[0].mxu1 %vm406_vm2, %v418_v26 }
 0x231   : > { %779 = vmatpush3.bf16.xpose.msra.mxu1 %v480_v25  ;;  %780 = vmatprep.mubr.msk.bf16.mxu1 %vm856_vm0, %v855_v0 }
 0x238   : > { %781 = vmatmul.mubr.msk.bf16.vlgmr.msra.gmra.mrb[4].mxu1 %vm351_vm1, %v470_v27 }
 0x303   : > { %v460_v28 = vpop.f32.mrb[0].mxu1 }
 0x304   : > { %v776_v29 = vpop.f32.mrb[1].mxu1 }
 0x305   : > { %v463_v30 = vpop.f32.mrb[2].mxu1 }
 0x306   : > { %v777_v31 = vpop.f32.mrb[3].mxu1 }
 0x30b   : > { %v516_v32 = vpop.f32.mrb[4].mxu1 }
 0x30c   : > { %v522_v33 = vmul.f32 0.125, %v516_v32  ;;  %v782_v34 = vpop.f32.mrb[5].mxu1 }
 0x30d   : > { %v519_v35 = vpop.f32.mrb[6].mxu1 }
 0x30e   : > { %v783_v36 = vpop.f32.mrb[7].mxu1  ;;  %v523_v37 = vadd.f32 %v745_v5, %v522_v33 }
 0x310   : > { %v524_v38 = vsel %vm406_vm2, %v523_v37, -inf }
 0x311   : > { %525 = vmax.xlane.f32.xlu0 %v524_v38 }
 0x327   : > { %539 = vrot.lane.b32.xlu0 %v750_v39, %s857_s30 }
 0x39e   : > { %v526_v40 = vpop.xlane.xlu0 %525 }
 0x39f   : > { %v527_v41 = vsub.f32 %v523_v37, %v526_v40 }
 0x3a1   : > { %v528_v42 = vmul.f32 1.442695, %v527_v41 }
 0x3a2   : > { %v540_v45 = vpop.permute.xlu0 %539 }
 0x3a3   : > { %827 = vpow2.f32 %v528_v42  ;;  %v545_v46 = vsel %vm422_vm3, %v540_v45, 0 }
 0x3a4   : > { %785 = vmatpush3.bf16.msra.mxu0 %v545_v46 }
 0x3ad   : > { %v828_v43 = vpop.eup %827 }
 0x3ae   : > { %v530_v44 = vsel %vm406_vm2, %v828_v43, 0.0 }
 0x3af   : > { %531 = vadd.xlane.f32.xlu1 %v530_v44 }
 0x43c   : > { %v532_v47 = vpop.xlane.xlu1 %531 }
 0x43d   : > { %829 = vrcp.f32 %v532_v47 }
 0x447   : > { %v830_v48 = vpop.eup %829 }
 0x448   : > { %v534_v49 = vmul.f32 %v830_v48, %v828_v43 }
 0x44a   : > { %v535_v50 = vpack.c.bf16 %v534_v49, %v534_v49 }
 0x44c   : > { %787 = vmatmul.mubr.msk.bf16.vlgmr.msra.gmra.mrb[4].mxu0 %vm406_vm2, %v535_v50 }
 0x51f   : > { %v581_v51 = vpop.f32.mrb[4].mxu0 }
 0x520   : > { %588 = vrot.lane.b32.xlu0 %v581_v51, %s857_s30  ;;  %v788_v52 = vpop.f32.mrb[5].mxu0 }
 0x521   : > { %v584_v53 = vpop.f32.mrb[6].mxu0 }
 0x522   : > { %v789_v54 = vpop.f32.mrb[7].mxu0 }
 0x592   : > { %v589_v55 = vpop.permute.xlu0 %588 }
 0x593   : > { %v591_v56 = vsel %vm351_vm1, %v460_v28, %v589_v55 }
 0x594   : > { %v592_v57 = vpack.c.bf16 %v591_v56, %v591_v56 }
 0x596   : > { %593 = vst [vmem:[%s345_s12] sm:$0xf] %v592_v57 }
 0x597 PF: > { %s14_s17 = sadd.s32 1, %s853_s17   ;;  %s961_s15 = smov %s849_s16 }
 0x598   : > { %p11_p5 = scmp.ge.s32.totalorder %s14_s17, 4   ;;  %s962_s16 = smov %s964_s18 }
 0x59a   :  { %13 = sbr.rel (!%p11_p5) target bundleno = 2 (0x2), region = 75 }

// kernel: _lambda_.14
= control target key start
LH: loop header
LB: loop body
LE: loop exit
PB: predicated region body
PF: predicated region fallthrough
CT: control target
= control target key end

     0   :  { %v453_v0 = vmov 0.0   ;;  %vm454_vm0 = vmmov 0   ;;  %v455_v3 = vmov 0   ;;  %v306_v27 = vlaneseq  ;;  %s566_s1 = inlined_call_operand.vmem [shape: bf16[128,384], index: 1, kind: input, shape index: {}]   ;;  %s567_s0 = inlined_call_operand.vmem [shape: bf16[16,128], index: 0, kind: input, shape index: {}]   ;;  %s568_s2 = inlined_call_operand.vmem [shape: f32[1,384], index: 2, kind: input, shape index: {}]   ;;  %s569_s3 = inlined_call_operand.vmem [shape: bf16[16,384], index: 3, kind: output, shape index: {}]  }
   0x1   :  { %397 = vmatprep.subr.bf16.mxu1 %v453_v0  ;;  %v420_v1 = vld [vmem:[%s566_s1 + $0x4] ss:$12 sps:$4 sm:$0xff]   ;;  %413 = vmatprep.mubr.msk.bf16.mxu1 %vm454_vm0, %v453_v0  ;;  %v422_v2 = vld [vmem:[%s566_s1 + $0x8] ss:$12 sps:$4 sm:$0xff]   ;;  %v423_v4 = vld [vmem:[%s566_s1] ss:$12 sps:$4 sm:$0xff]  }
   0x2   :  { %231 = vmatprep.mubr.bf16.mxu0 %v455_v3  ;;  %199 = vmatprep.subr.bf16.mxu0 %v420_v1  ;;  %v424_v5 = vld [vmem:[%s566_s1 + $0x1c] ss:$12 sps:$4 sm:$0xff]   ;;  %v426_v6 = vld [vmem:[%s566_s1 + $0x20] ss:$12 sps:$4 sm:$0xff]   ;;  %v427_v7 = vld [vmem:[%s566_s1 + $0x18] ss:$12 sps:$4 sm:$0xff]  }
   0x3   :  { %398 = vmatpush3.bf16.msra.mxu1 %v422_v2  ;;  %200 = vmatpush1.bf16.msra.mxu0 %v423_v4  ;;  %v428_v8 = vld [vmem:[%s566_s1 + $0x34] ss:$12 sps:$4 sm:$0xff]   ;;  %v430_v9 = vld [vmem:[%s566_s1 + $0x38] ss:$12 sps:$4 sm:$0xff]   ;;  %v431_v10 = vld [vmem:[%s566_s1 + $0x30] ss:$12 sps:$4 sm:$0xff]  }
   0x4   :  { %399 = vmatprep.subr.bf16.mxu1 %v453_v0  ;;  %201 = vmatprep.subr.bf16.mxu0 %v424_v5  ;;  %v432_v11 = vld [vmem:[%s566_s1 + $0x4c] ss:$12 sps:$4 sm:$0xff]   ;;  %v434_v12 = vld [vmem:[%s566_s1 + $0x50] ss:$12 sps:$4 sm:$0xff]   ;;  %v435_v13 = vld [vmem:[%s566_s1 + $0x48] ss:$12 sps:$4 sm:$0xff]  }
   0x5   :  { %v436_v14 = vld [vmem:[%s566_s1 + $0x64] ss:$12 sps:$4 sm:$0xff]   ;;  %v438_v15 = vld [vmem:[%s566_s1 + $0x68] ss:$12 sps:$4 sm:$0xff]   ;;  %v439_v16 = vld [vmem:[%s566_s1 + $0x60] ss:$12 sps:$4 sm:$0xff]  }
   0x6   :  { %v440_v17 = vld [vmem:[%s566_s1 + $0x7c] ss:$12 sps:$4 sm:$0xff]   ;;  %v442_v18 = vld [vmem:[%s566_s1 + $0x80] ss:$12 sps:$4 sm:$0xff]   ;;  %v443_v19 = vld [vmem:[%s566_s1 + $0x78] ss:$12 sps:$4 sm:$0xff]  }
   0x7   :  { %400 = vmatpush3.bf16.msra.mxu1 %v426_v6  ;;  %202 = vmatpush1.bf16.msra.mxu0 %v427_v7  ;;  %v444_v20 = vld [vmem:[%s566_s1 + $0x94] ss:$12 sps:$4 sm:$0xff]   ;;  %v446_v21 = vld [vmem:[%s566_s1 + $0x98] ss:$12 sps:$4 sm:$0xff]   ;;  %v447_v22 = vld [vmem:[%s566_s1 + $0x90] ss:$12 sps:$4 sm:$0xff]  }
   0x8   :  { %401 = vmatprep.subr.bf16.mxu1 %v453_v0  ;;  %203 = vmatprep.subr.bf16.mxu0 %v428_v8  ;;  %v448_v23 = vld [vmem:[%s566_s1 + $0xac] ss:$12 sps:$4 sm:$0xff]   ;;  %v450_v24 = vld [vmem:[%s566_s1 + $0xb0] ss:$12 sps:$4 sm:$0xff]   ;;  %v451_v25 = vld [vmem:[%s566_s1 + $0xa8] ss:$12 sps:$4 sm:$0xff]  }
   0x9   :  { %v452_v26 = vld [vmem:[%s567_s0] sm:$0xff]   ;;  %v307_v28 = vshrl.u32 %v306_v27, 7 }
   0xa   :  { %v304_v30 = vld [vmem:[%s568_s2] sm:$0x7] }
   0xb   :  { %402 = vmatpush3.bf16.msra.mxu1 %v430_v9  ;;  %204 = vmatpush1.bf16.msra.mxu0 %v431_v10  ;;  %v316_v29 = vsub.s32 2, %v307_v28  ;;  %v308_v31 = vsub.s32 0, %v307_v28  ;;  %v312_v32 = vsub.s32 1, %v307_v28 }
   0xc   :  { %403 = vmatprep.subr.bf16.mxu1 %v453_v0  ;;  %205 = vmatprep.subr.bf16.mxu0 %v432_v11 }
   0xd   :  { %v317_v33 = vrot.slane %v304_v30, %v316_v29  ;;  %v309_v34 = vrot.slane %v304_v30, %v308_v31  ;;  %v313_v35 = vrot.slane %v304_v30, %v312_v32 }
   0xf   :  { %404 = vmatpush3.bf16.msra.mxu1 %v434_v12  ;;  %206 = vmatpush1.bf16.msra.mxu0 %v435_v13 }
  0x10   :  { %405 = vmatprep.subr.bf16.mxu1 %v453_v0  ;;  %207 = vmatprep.subr.bf16.mxu0 %v436_v14 }
  0x13   :  { %406 = vmatpush3.bf16.msra.mxu1 %v438_v15  ;;  %208 = vmatpush1.bf16.msra.mxu0 %v439_v16 }
  0x14   :  { %407 = vmatprep.subr.bf16.mxu1 %v453_v0  ;;  %209 = vmatprep.subr.bf16.mxu0 %v440_v17 }
  0x17   :  { %408 = vmatpush3.bf16.msra.mxu1 %v442_v18  ;;  %210 = vmatpush1.bf16.msra.mxu0 %v443_v19 }
  0x18   :  { %409 = vmatprep.subr.bf16.mxu1 %v453_v0  ;;  %211 = vmatprep.subr.bf16.mxu0 %v444_v20 }
  0x1b   :  { %410 = vmatpush3.bf16.msra.mxu1 %v446_v21  ;;  %212 = vmatpush1.bf16.msra.mxu0 %v447_v22 }
  0x1c   :  { %411 = vmatprep.subr.bf16.mxu1 %v453_v0  ;;  %213 = vmatprep.subr.bf16.mxu0 %v448_v23 }
  0x1f   :  { %412 = vmatpush3.bf16.msra.mxu1 %v450_v24  ;;  %214 = vmatpush1.bf16.msra.mxu0 %v451_v25 }
  0x22   :  { %414 = vmatmul.mubr.bf16.vlgmr.msra.gmra.mrb[0].mxu1 %v452_v26  ;;  %232 = vmatmul.mubr.bf16.vlgmr.msra.gmra.mrb[0].mxu0 %v452_v26 }
  0xf5   :  { %v276_v36 = vpop.f32.mrb[0].mxu1  ;;  %v233_v38 = vpop.f32.mrb[0].mxu0 }
  0xf6   :  { %v323_v37 = vadd.f32 %v317_v33, %v276_v36  ;;  %v415_v39 = vpop.f32.mrb[1].mxu1  ;;  %v321_v40 = vadd.f32 %v309_v34, %v233_v38  ;;  %v235_v41 = vpop.f32.mrb[1].mxu0 }
  0xf7   :  { %v279_v42 = vpop.f32.mrb[2].mxu1  ;;  %v322_v44 = vadd.f32 %v313_v35, %v235_v41  ;;  %v237_v46 = vpop.f32.mrb[2].mxu0 }
  0xf8   :  { %v385_v43 = vpack.c.bf16 %v323_v37, %v323_v37  ;;  %v326_v45 = vadd.f32 %v317_v33, %v279_v42  ;;  %v416_v47 = vpop.f32.mrb[3].mxu1  ;;  %v324_v48 = vadd.f32 %v309_v34, %v237_v46  ;;  %v239_v49 = vpop.f32.mrb[3].mxu0 }
  0xf9   :  { %v384_v50 = vpack.c.bf16 %v322_v44, %v321_v40  ;;  %v325_v52 = vadd.f32 %v313_v35, %v239_v49 }
  0xfa   :  { %348 = vst [vmem:[%s569_s3 + $0x8] sm:$0xf] %v385_v43  ;;  %v387_v51 = vpack.c.bf16 %v326_v45, %v326_v45 }
  0xfb   :  { %347 = vst [vmem:[%s569_s3] sm:$0xff] %v384_v50  ;;  %v386_v53 = vpack.c.bf16 %v325_v52, %v324_v48 }
  0xfc   :  { %350 = vst [vmem:[%s569_s3 + $0x14] sm:$0xf] %v387_v51 }
  0xfd   :  { %349 = vst [vmem:[%s569_s3 + $0xc] sm:$0xff] %v386_v53 }

// kernel: _lambda_.24
= control target key start
LH: loop header
LB: loop body
LE: loop exit
PB: predicated region body
PF: predicated region fallthrough
CT: control target
= control target key end

     0   :  { %v197_v0 = vmov 0.0   ;;  %vm198_vm0 = vmmov 0   ;;  %s252_s1 = inlined_call_operand.vmem [shape: bf16[128,128], index: 1, kind: input, shape index: {}]   ;;  %s253_s0 = inlined_call_operand.vmem [shape: bf16[2,128], index: 0, kind: input, shape index: {}]   ;;  %s254_s2 = inlined_call_operand.vmem [shape: f32[1,128], index: 2, kind: input, shape index: {}]   ;;  %s255_s3 = inlined_call_operand.vmem [shape: bf16[2,128], index: 3, kind: output, shape index: {}]  }
   0x1   :  { %165 = vmatprep.subr.bf16.mxu0 %v197_v0  ;;  %19 = vst [vmem:[#allocation2] sm:$0x3] %v197_v0  ;;  %v187_v1 = vld [vmem:[%s252_s1] sm:$0xff]   ;;  %181 = vmatprep.mubr.msk.bf16.mxu0 %vm198_vm0, %v197_v0  ;;  %v188_v2 = vld [vmem:[%s252_s1 + $0x8] sm:$0xff]   ;;  %v189_v3 = vld [vmem:[%s252_s1 + $0x10] sm:$0xff]  }
   0x2   :  { %166 = vmatpush3.bf16.msra.mxu0 %v187_v1  ;;  %v190_v4 = vld [vmem:[%s252_s1 + $0x18] sm:$0xff]   ;;  %v191_v5 = vld [vmem:[%s252_s1 + $0x20] sm:$0xff]   ;;  %v192_v6 = vld [vmem:[%s252_s1 + $0x28] sm:$0xff]  }
   0x3   :  { %167 = vmatprep.subr.bf16.mxu0 %v197_v0  ;;  %v193_v7 = vld [vmem:[%s252_s1 + $0x30] sm:$0xff]   ;;  %v194_v8 = vld [vmem:[%s252_s1 + $0x38] sm:$0xff]   ;;  %v21_v9 = vld [vmem:[%s253_s0] sm:$0x1] }
   0x4   :  { %v155_v16 = vld [vmem:[%s254_s2] ss:$0 sm:$0xff] }
   0x6   :  { %168 = vmatpush3.bf16.msra.mxu0 %v188_v2 }
   0x7   :  { %169 = vmatprep.subr.bf16.mxu0 %v197_v0 }
   0x8   :  { %v20_v10 = vld [vmem:[#allocation2] sm:$0x3] }
   0xa   :  { %170 = vmatpush3.bf16.msra.mxu0 %v189_v3 }
   0xb   :  { %171 = vmatprep.subr.bf16.mxu0 %v197_v0 }
   0xe   :  { %172 = vmatpush3.bf16.msra.mxu0 %v190_v4 }
   0xf   :  { %173 = vmatprep.subr.bf16.mxu0 %v197_v0 }
  0x12   :  { %174 = vmatpush3.bf16.msra.mxu0 %v191_v5 }
  0x13   :  { %175 = vmatprep.subr.bf16.mxu0 %v197_v0 }
  0x16   :  { %176 = vmatpush3.bf16.msra.mxu0 %v192_v6 }
  0x17   :  { %177 = vmatprep.subr.bf16.mxu0 %v197_v0 }
  0x1a   :  { %178 = vmatpush3.bf16.msra.mxu0 %v193_v7 }
  0x1b   :  { %179 = vmatprep.subr.bf16.mxu0 %v197_v0 }
  0x1e   :  { %180 = vmatpush3.bf16.msra.mxu0 %v194_v8 }
  0x21   :  { %182 = vmatmul.mubr.bf16.vlgmr.msra.gmra.mrb[0].mxu0 %v21_v9 }
  0xf4   :  { %v120_v11 = vpop.f32.mrb[0].mxu0 }
  0xf5   :  { %v126_v12 = vadd.f32 %v120_v11, %v20_v10  ;;  %v183_v13 = vpop.f32.mrb[1].mxu0 }
  0xf6   :  { %v123_v14 = vpop.f32.mrb[2].mxu0 }
  0xf7   :  { %127 = vst [vmem:[#allocation2] sm:$0x3] %v126_v12  ;;  %v184_v15 = vpop.f32.mrb[3].mxu0 }
  0xfe   :  { %v131_v17 = vld [vmem:[#allocation2] sm:$0x3] }
  0xff   :  { %v139_v18 = vadd.f32 %v155_v16, %v131_v17 }
 0x101   :  { %195 = vtanh.f32 %v139_v18 }
 0x10b   :  { %v196_v19 = vpop.eup %195 }
 0x10c   :  { %v141_v20 = vpack.c.bf16 %v196_v19, %v196_v19 }
 0x10e   :  { %142 = vst [vmem:[%s255_s3] sm:$0x1] %v141_v20 }

// kernel: _lambda_.17
= control target key start
LH: loop header
LB: loop body
LE: loop exit
PB: predicated region body
PF: predicated region fallthrough
CT: control target
= control target key end

     0   :  { %v314_v1 = vmov 0   ;;  %v191_v18 = vlaneseq  ;;  %s395_s1 = inlined_call_operand.vmem [shape: bf16[128,256], index: 1, kind: input, shape index: {}]   ;;  %s396_s0 = inlined_call_operand.vmem [shape: bf16[16,128], index: 0, kind: input, shape index: {}]   ;;  %s397_s2 = inlined_call_operand.vmem [shape: f32[1,256], index: 2, kind: input, shape index: {}]   ;;  %s398_s3 = inlined_call_operand.vmem [shape: bf16[16,256], index: 3, kind: output, shape index: {}]  }
   0x1   :  { %v281_v0 = vld [vmem:[%s395_s1 + $0x4] ss:$8 sps:$4 sm:$0xff]   ;;  %163 = vmatprep.mubr.bf16.mxu0 %v314_v1  ;;  %v283_v2 = vld [vmem:[%s395_s1] ss:$8 sps:$4 sm:$0xff]   ;;  %v284_v3 = vld [vmem:[%s395_s1 + $0x14] ss:$8 sps:$4 sm:$0xff]  }
   0x2   :  { %131 = vmatprep.subr.bf16.mxu0 %v281_v0  ;;  %v286_v4 = vld [vmem:[%s395_s1 + $0x10] ss:$8 sps:$4 sm:$0xff]   ;;  %v287_v5 = vld [vmem:[%s395_s1 + $0x24] ss:$8 sps:$4 sm:$0xff]   ;;  %v289_v6 = vld [vmem:[%s395_s1 + $0x20] ss:$8 sps:$4 sm:$0xff]  }
   0x3   :  { %132 = vmatpush1.bf16.msra.mxu0 %v283_v2  ;;  %v290_v7 = vld [vmem:[%s395_s1 + $0x34] ss:$8 sps:$4 sm:$0xff]   ;;  %v292_v8 = vld [vmem:[%s395_s1 + $0x30] ss:$8 sps:$4 sm:$0xff]   ;;  %v293_v9 = vld [vmem:[%s395_s1 + $0x44] ss:$8 sps:$4 sm:$0xff]  }
   0x4   :  { %133 = vmatprep.subr.bf16.mxu0 %v284_v3  ;;  %v295_v10 = vld [vmem:[%s395_s1 + $0x40] ss:$8 sps:$4 sm:$0xff]   ;;  %v296_v11 = vld [vmem:[%s395_s1 + $0x54] ss:$8 sps:$4 sm:$0xff]   ;;  %v298_v12 = vld [vmem:[%s395_s1 + $0x50] ss:$8 sps:$4 sm:$0xff]  }
   0x5   :  { %v299_v13 = vld [vmem:[%s395_s1 + $0x64] ss:$8 sps:$4 sm:$0xff]   ;;  %v301_v14 = vld [vmem:[%s395_s1 + $0x60] ss:$8 sps:$4 sm:$0xff]   ;;  %v302_v15 = vld [vmem:[%s395_s1 + $0x74] ss:$8 sps:$4 sm:$0xff]  }
   0x6   :  { %v304_v16 = vld [vmem:[%s395_s1 + $0x70] ss:$8 sps:$4 sm:$0xff]   ;;  %v305_v17 = vld [vmem:[%s396_s0] sm:$0xff]   ;;  %v192_v19 = vshrl.u32 %v191_v18, 7 }
   0x7   :  { %134 = vmatpush1.bf16.msra.mxu0 %v286_v4  ;;  %v189_v21 = vld [vmem:[%s397_s2] sm:$0x3] }
   0x8   :  { %135 = vmatprep.subr.bf16.mxu0 %v287_v5  ;;  %v193_v20 = vsub.s32 0, %v192_v19  ;;  %v197_v22 = vsub.s32 1, %v192_v19 }
   0xa   :  { %v194_v23 = vrot.slane %v189_v21, %v193_v20  ;;  %v198_v24 = vrot.slane %v189_v21, %v197_v22 }
   0xb   :  { %136 = vmatpush1.bf16.msra.mxu0 %v289_v6 }
   0xc   :  { %137 = vmatprep.subr.bf16.mxu0 %v290_v7 }
   0xf   :  { %138 = vmatpush1.bf16.msra.mxu0 %v292_v8 }
  0x10   :  { %139 = vmatprep.subr.bf16.mxu0 %v293_v9 }
  0x13   :  { %140 = vmatpush1.bf16.msra.mxu0 %v295_v10 }
  0x14   :  { %141 = vmatprep.subr.bf16.mxu0 %v296_v11 }
  0x17   :  { %142 = vmatpush1.bf16.msra.mxu0 %v298_v12 }
  0x18   :  { %143 = vmatprep.subr.bf16.mxu0 %v299_v13 }
  0x1b   :  { %144 = vmatpush1.bf16.msra.mxu0 %v301_v14 }
  0x1c   :  { %145 = vmatprep.subr.bf16.mxu0 %v302_v15 }
  0x1f   :  { %146 = vmatpush1.bf16.msra.mxu0 %v304_v16 }
  0x22   :  { %164 = vmatmul.mubr.bf16.vlgmr.msra.gmra.mrb[0].mxu0 %v305_v17 }
  0xf5   :  { %v165_v25 = vpop.f32.mrb[0].mxu0 }
  0xf6   :  { %v201_v26 = vadd.f32 %v194_v23, %v165_v25  ;;  %v167_v27 = vpop.f32.mrb[1].mxu0 }
  0xf7   :  { %v202_v28 = vadd.f32 %v198_v24, %v167_v27  ;;  %v169_v29 = vpop.f32.mrb[2].mxu0 }
  0xf8   :  { %v205_v30 = vmul.f32 %v201_v26, %v201_v26  ;;  %v203_v31 = vadd.f32 %v194_v23, %v169_v29  ;;  %v171_v32 = vpop.f32.mrb[3].mxu0 }
  0xf9   :  { %v206_v33 = vmul.f32 %v202_v28, %v202_v28  ;;  %v204_v34 = vadd.f32 %v198_v24, %v171_v32 }
  0xfa   :  { %v209_v35 = vmul.f32 %v205_v30, %v201_v26  ;;  %v207_v36 = vmul.f32 %v203_v31, %v203_v31 }
  0xfb   :  { %v210_v37 = vmul.f32 %v206_v33, %v202_v28  ;;  %v208_v38 = vmul.f32 %v204_v34, %v204_v34 }
  0xfc   :  { %v213_v39 = vmul.f32 0.044715, %v209_v35  ;;  %v211_v40 = vmul.f32 %v207_v36, %v203_v31 }
  0xfd   :  { %v214_v41 = vmul.f32 0.044715, %v210_v37  ;;  %v212_v42 = vmul.f32 %v208_v38, %v204_v34 }
  0xfe   :  { %v217_v43 = vadd.f32 %v213_v39, %v201_v26  ;;  %v215_v44 = vmul.f32 0.044715, %v211_v40 }
  0xff   :  { %v218_v45 = vadd.f32 %v214_v41, %v202_v28  ;;  %v216_v46 = vmul.f32 0.044715, %v212_v42 }
 0x100   :  { %v221_v47 = vmul.f32 0.7978846, %v217_v43  ;;  %v219_v48 = vadd.f32 %v215_v44, %v203_v31 }
 0x101   :  { %v222_v49 = vmul.f32 0.7978846, %v218_v45  ;;  %v220_v50 = vadd.f32 %v216_v46, %v204_v34 }
 0x102   :  { %306 = vtanh.f32 %v221_v47  ;;  %v223_v51 = vmul.f32 0.7978846, %v219_v48 }
 0x103   :  { %308 = vtanh.f32 %v222_v49  ;;  %v224_v52 = vmul.f32 0.7978846, %v220_v50 }
 0x104   :  { %310 = vtanh.f32 %v223_v51 }
 0x105   :  { %312 = vtanh.f32 %v224_v52 }
 0x10c   :  { %v307_v53 = vpop.eup %306 }
 0x10d   :  { %v309_v54 = vpop.eup %308  ;;  %v229_v55 = vadd.f32 1.0, %v307_v53 }
 0x10e   :  { %v311_v56 = vpop.eup %310  ;;  %v230_v57 = vadd.f32 1.0, %v309_v54 }
 0x10f   :  { %v313_v58 = vpop.eup %312  ;;  %v233_v59 = vmul.f32 0.5, %v229_v55  ;;  %v231_v60 = vadd.f32 1.0, %v311_v56 }
 0x110   :  { %v234_v61 = vmul.f32 0.5, %v230_v57  ;;  %v232_v62 = vadd.f32 1.0, %v313_v58 }
 0x111   :  { %v237_v63 = vmul.f32 %v233_v59, %v201_v26  ;;  %v235_v0 = vmul.f32 0.5, %v231_v60 }
 0x112   :  { %v238_v1 = vmul.f32 %v234_v61, %v202_v28  ;;  %v236_v2 = vmul.f32 0.5, %v232_v62 }
 0x113   :  { %v239_v3 = vmul.f32 %v235_v0, %v203_v31 }
 0x114   :  { %v278_v4 = vpack.c.bf16 %v238_v1, %v237_v63  ;;  %v240_v5 = vmul.f32 %v236_v2, %v204_v34 }
 0x116   :  { %253 = vst [vmem:[%s398_s3] sm:$0xff] %v278_v4  ;;  %v279_v6 = vpack.c.bf16 %v240_v5, %v239_v3 }
 0x118   :  { %254 = vst [vmem:[%s398_s3 + $0x8] sm:$0xff] %v279_v6 }

// kernel: _lambda_.18
= control target key start
LH: loop header
LB: loop body
LE: loop exit
PB: predicated region body
PF: predicated region fallthrough
CT: control target
= control target key end

     0   :  { %s475_s1 = inlined_call_operand.vmem [shape: bf16[256,128], index: 1, kind: input, shape index: {}]   ;;  %s476_s0 = inlined_call_operand.vmem [shape: bf16[16,256], index: 0, kind: input, shape index: {}]   ;;  %s477_s3 = inlined_call_operand.vmem [shape: bf16[16,128], index: 3, kind: input, shape index: {}]   ;;  %s478_s2 = inlined_call_operand.vmem [shape: f32[1,128], index: 2, kind: input, shape index: {}]   ;;  %s479_s4 = inlined_call_operand.vmem [shape: f32[1,128], index: 4, kind: input, shape index: {}]   ;;  %s480_s5 = inlined_call_operand.vmem [shape: f32[1,128], index: 5, kind: input, shape index: {}]   ;;  %s481_s6 = inlined_call_operand.vmem [shape: bf16[16,128], index: 6, kind: output, shape index: {}]  }
   0x1   :  { %v348_v0 = vld [vmem:[%s475_s1 + $0x40] sm:$0xff]   ;;  %v350_v2 = vld [vmem:[%s475_s1 + $0x48] sm:$0xff]   ;;  %v352_v4 = vld [vmem:[%s475_s1 + $0x50] sm:$0xff]  }
   0x2   :  { %v349_v1 = vld [vmem:[%s475_s1] sm:$0xff]   ;;  %326 = vmatprep.subr.bf16.mxu0 %v348_v0  ;;  %v351_v3 = vld [vmem:[%s475_s1 + $0x8] sm:$0xff]   ;;  %v353_v5 = vld [vmem:[%s475_s1 + $0x10] sm:$0xff]  }
   0x3   :  { %327 = vmatpush3.bf16.msra.mxu0 %v349_v1  ;;  %v354_v6 = vld [vmem:[%s475_s1 + $0x58] sm:$0xff]   ;;  %v356_v8 = vld [vmem:[%s475_s1 + $0x60] sm:$0xff]   ;;  %v358_v10 = vld [vmem:[%s475_s1 + $0x68] sm:$0xff]  }
   0x4   :  { %328 = vmatprep.subr.bf16.mxu0 %v350_v2  ;;  %v355_v7 = vld [vmem:[%s475_s1 + $0x18] sm:$0xff]   ;;  %v357_v9 = vld [vmem:[%s475_s1 + $0x20] sm:$0xff]   ;;  %v359_v12 = vld [vmem:[%s475_s1 + $0x28] sm:$0xff]  }
   0x5   :  { %v366_v11 = vld [vmem:[%s476_s0 + $0x4] ss:$8 sps:$4 sm:$0xff]   ;;  %v360_v13 = vld [vmem:[%s475_s1 + $0x70] sm:$0xff]   ;;  %v362_v15 = vld [vmem:[%s475_s1 + $0x78] sm:$0xff]  }
   0x6   :  { %204 = vmatprep.mubr.bf16.mxu0 %v366_v11  ;;  %v361_v14 = vld [vmem:[%s475_s1 + $0x30] sm:$0xff]   ;;  %v363_v16 = vld [vmem:[%s475_s1 + $0x38] sm:$0xff]   ;;  %v364_v17 = vld [vmem:[%s476_s0] ss:$8 sps:$4 sm:$0xff]  }
   0x7   :  { %329 = vmatpush3.bf16.msra.mxu0 %v351_v3  ;;  %v318_v18 = vld [vmem:[%s477_s3] sm:$0xff]  }
   0x8   :  { %330 = vmatprep.subr.bf16.mxu0 %v352_v4  ;;  %v310_v21 = vld [vmem:[%s478_s2] ss:$0 sm:$0xff]  ;;  %v319_v24 = vunpack.c.l.bf16 %v318_v18  ;;  %v320_v30 = vunpack.c.h.bf16 %v318_v18 }
   0x9   :  { %v311_v48 = vld [vmem:[%s479_s4] ss:$0 sm:$0xff] }
   0xa   :  { %v312_v52 = vld [vmem:[%s480_s5] ss:$0 sm:$0xff] }
   0xb   :  { %331 = vmatpush3.bf16.msra.mxu0 %v353_v5 }
   0xc   :  { %332 = vmatprep.subr.bf16.mxu0 %v354_v6 }
   0xf   :  { %333 = vmatpush3.bf16.msra.mxu0 %v355_v7 }
  0x10   :  { %334 = vmatprep.subr.bf16.mxu0 %v356_v8 }
  0x13   :  { %335 = vmatpush3.bf16.msra.mxu0 %v357_v9 }
  0x14   :  { %336 = vmatprep.subr.bf16.mxu0 %v358_v10 }
  0x17   :  { %337 = vmatpush3.bf16.msra.mxu0 %v359_v12 }
  0x18   :  { %338 = vmatprep.subr.bf16.mxu0 %v360_v13 }
  0x1b   :  { %339 = vmatpush3.bf16.msra.mxu0 %v361_v14 }
  0x1c   :  { %340 = vmatprep.subr.bf16.mxu0 %v362_v15 }
  0x1f   :  { %341 = vmatpush3.bf16.msra.mxu0 %v363_v16 }
  0x22   :  { %205 = vmatmul.mubr.bf16.vlgmr.msra.gmra.mrb[0].mxu0 %v364_v17 }
  0xf5   :  { %v342_v19 = vpop.f32.mrb[0].mxu0 }
  0xf6   :  { %v343_v20 = vpop.f32.mrb[1].mxu0 }
  0xf7   :  { %v344_v22 = vadd.f32 %v343_v20, %v342_v19  ;;  %v345_v23 = vpop.f32.mrb[2].mxu0 }
  0xf8   :  { %v346_v25 = vpop.f32.mrb[3].mxu0 }
  0xf9   :  { %v229_v26 = vadd.f32 %v344_v22, %v310_v21  ;;  %v347_v27 = vadd.f32 %v346_v25, %v345_v23 }
  0xfb   :  { %v230_v28 = vadd.f32 %v347_v27, %v310_v21  ;;  %v235_v29 = vadd.f32 %v319_v24, %v229_v26 }
  0xfd   :  { %237 = vadd.xlane.f32.xlu0 %v235_v29  ;;  %v236_v31 = vadd.f32 %v320_v30, %v230_v28 }
 0x101   :  { %239 = vadd.xlane.f32.xlu0 %v236_v31 }
 0x18a   :  { %v238_v32 = vpop.xlane.xlu0 %237 }
 0x18b   :  { %v242_v33 = vmul.f32 0.0078125, %v238_v32 }
 0x18d   :  { %v244_v34 = vsub.f32 %v235_v29, %v242_v33 }
 0x18e   :  { %v240_v35 = vpop.xlane.xlu0 %239 }
 0x18f   :  { %v243_v36 = vmul.f32 0.0078125, %v240_v35  ;;  %v246_v37 = vmul.f32 %v244_v34, %v244_v34 }
 0x191   :  { %v245_v38 = vsub.f32 %v236_v31, %v243_v36  ;;  %248 = vadd.xlane.f32.xlu1 %v246_v37 }
 0x193   :  { %v247_v39 = vmul.f32 %v245_v38, %v245_v38 }
 0x195   :  { %250 = vadd.xlane.f32.xlu1 %v247_v39 }
 0x21e   :  { %v249_v40 = vpop.xlane.xlu1 %248 }
 0x21f   :  { %v252_v41 = vmul.f32 0.0078125, %v249_v40 }
 0x221   :  { %v254_v42 = vadd.f32 1e-12, %v252_v41 }
 0x222   :  { %v251_v43 = vpop.xlane.xlu1 %250 }
 0x223   :  { %367 = vrsqrt.f32 %v254_v42  ;;  %v253_v44 = vmul.f32 0.0078125, %v251_v43 }
 0x225   :  { %v255_v45 = vadd.f32 1e-12, %v253_v44 }
 0x227   :  { %369 = vrsqrt.f32 %v255_v45 }
 0x22d   :  { %v368_v46 = vpop.eup %367 }
 0x22e   :  { %v258_v47 = vmul.f32 %v368_v46, %v244_v34 }
 0x230   :  { %v267_v50 = vmul.f32 %v311_v48, %v258_v47 }
 0x231   :  { %v370_v49 = vpop.eup %369 }
 0x232   :  { %v259_v51 = vmul.f32 %v370_v49, %v245_v38  ;;  %v276_v54 = vadd.f32 %v312_v52, %v267_v50 }
 0x234   :  { %v268_v53 = vmul.f32 %v311_v48, %v259_v51 }
 0x236   :  { %v277_v55 = vadd.f32 %v312_v52, %v268_v53 }
 0x238   :  { %v324_v56 = vpack.c.bf16 %v277_v55, %v276_v54 }
 0x23a   :  { %325 = vst [vmem:[%s481_s6] sm:$0xff] %v324_v56  }

// kernel: _lambda_.25
= control target key start
LH: loop header
LB: loop body
LE: loop exit
PB: predicated region body
PF: predicated region fallthrough
CT: control target
= control target key end

     0   :  { %v242_v1 = vmov 0.0   ;;  %vm243_vm0 = vmmov 0   ;;  %vm20_vm1 = vcmask 58368   ;;  %s310_s0 = inlined_call_operand.vmem [shape: bf16[2,128], index: 0, kind: input, shape index: {}]   ;;  %s311_s1 = inlined_call_operand.vmem [shape: bf16[128,8], index: 1, kind: input, shape index: {}]   ;;  %s312_s2 = inlined_call_operand.vmem [shape: f32[1,8], index: 2, kind: input, shape index: {}]   ;;  %s313_s3 = inlined_call_operand.hbm [shape: f32[2,8], index: 3, kind: output, shape index: {}]  }
   0x1   :  { %v206_v0 = vld [vmem:[%s311_s1] sm:$0xff]   ;;  %183 = vmatprep.subr.bf16.mxu0 %v242_v1  ;;  %v207_v2 = vld [vmem:[%s311_s1 + $0x8] sm:$0xff]   ;;  %199 = vmatprep.mubr.msk.bf16.mxu0 %vm243_vm0, %v242_v1  ;;  %21 = vst.msk [vmem:[#allocation2] sm:$0x3] %vm20_vm1, %v242_v1  ;;  %v208_v3 = vld [vmem:[%s311_s1 + $0x10] sm:$0xff]  }
   0x2   :  { %184 = vmatpush3.bf16.msra.mxu0 %v206_v0 }
   0x3   :  { %185 = vmatprep.subr.bf16.mxu0 %v242_v1 }
   0x6   :  { %186 = vmatpush3.bf16.msra.mxu0 %v207_v2 }
   0x7   :  { %187 = vmatprep.subr.bf16.mxu0 %v242_v1 }
   0x8   :  { %8 = vsyncpa [#allocation4], 0  ;;  %v209_v4 = vld [vmem:[%s311_s1 + $0x18] sm:$0xff]   ;;  %v210_v5 = vld [vmem:[%s311_s1 + $0x20] sm:$0xff]  }
   0x9   :  { %v211_v6 = vld [vmem:[%s311_s1 + $0x28] sm:$0xff]   ;;  %v212_v7 = vld [vmem:[%s311_s1 + $0x30] sm:$0xff]   ;;  %v213_v8 = vld [vmem:[%s311_s1 + $0x38] sm:$0xff]  }
   0xa   :  { %188 = vmatpush3.bf16.msra.mxu0 %v208_v3  ;;  %v23_v9 = vld [vmem:[%s310_s0] sm:$0x1]  ;;  %s244_s0 = smov [#allocation3]  }
   0xb   :  { %189 = vmatprep.subr.bf16.mxu0 %v242_v1  ;;  %v22_v10 = vld [vmem:[#allocation2] sm:$0x3]  ;;  %s156_s1 = sshll.u32 %s244_s0, 4  ;;  %s157_s1 = int_to_ptr.vmem [resolvable:$true] %s156_s1 }
   0xc   :  { %v172_v16 = vld [vmem:[%s312_s2] ss:$0 sm:$0xff]  ;;  %s218_s5 = scalar_lea.vmem %s157_s1, 32  ;;  %p223_p1 = scmp.lt.s32.totalorder %s157_s1, %s157_s1 }
   0xd   :  { %p219_p0 = scmp.ne.s32.totalorder %s157_s1, %s218_s5  ;;  %p224_p2 = scmp.lt.s32.totalorder %s218_s5, %s218_s5 }
   0xe   :  { %190 = vmatpush3.bf16.msra.mxu0 %v209_v4 }
   0xf   :  { %191 = vmatprep.subr.bf16.mxu0 %v242_v1  ;;  %p225_p3 = por %p224_p2, %p223_p1 }
  0x11   :  { %p226_p4 = pnand %p225_p3, %p219_p0 }
  0x12   :  { %192 = vmatpush3.bf16.msra.mxu0 %v210_v5 }
  0x13   :  { %193 = vmatprep.subr.bf16.mxu0 %v242_v1 }
  0x16   :  { %194 = vmatpush3.bf16.msra.mxu0 %v211_v6 }
  0x17   :  { %195 = vmatprep.subr.bf16.mxu0 %v242_v1 }
  0x1a   :  { %196 = vmatpush3.bf16.msra.mxu0 %v212_v7 }
  0x1b   :  { %197 = vmatprep.subr.bf16.mxu0 %v242_v1 }
  0x1e   :  { %198 = vmatpush3.bf16.msra.mxu0 %v213_v8 }
  0x21   :  { %200 = vmatmul.mubr.bf16.vlgmr.msra.gmra.mrb[0].mxu0 %v23_v9 }
  0xf4   :  { %v122_v11 = vpop.f32.mrb[0].mxu0 }
  0xf5   :  { %v128_v12 = vadd.f32 %v122_v11, %v22_v10  ;;  %v201_v13 = vpop.f32.mrb[1].mxu0 }
  0xf6   :  { %v125_v14 = vpop.f32.mrb[2].mxu0 }
  0xf7   :  { %130 = vst.msk [vmem:[#allocation2] sm:$0x3] %vm20_vm1, %v128_v12  ;;  %v202_v15 = vpop.f32.mrb[3].mxu0 }
  0xfe   :  { %v134_v17 = vld [vmem:[#allocation2] sm:$0x3] }
  0xff   :  { %v142_v18 = vadd.f32 %v172_v16, %v134_v17 }
 0x101   :  { %v173_v19 = vmul.f32 -1.442695, %v142_v18 }
 0x103   :  { %214 = vpow2.f32 %v173_v19 }
 0x10d   :  { %v215_v20 = vpop.eup %214 }
 0x10e   :  { %v146_v21 = vadd.f32 1.0, %v215_v20 }
 0x110   :  { %216 = vrcp.f32 %v146_v21 }
 0x11a   :  { %v217_v22 = vpop.eup %216 }
 0x11b   :  { %149 = vst.msk [vmem:[#allocation3] sm:$0x3] %vm20_vm1, %v217_v22 }
 0x11c   :  { %229 = shalt.err (!%p226_p4)
}
 0x11d   :  { %s230_s7 = scalar_lea.hbm %s313_s3, 32 }
 0x11e   :  { %p231_p5 = scmp.ne.s32.totalorder %s313_s3, %s230_s7  ;;  %p234_p6 = scmp.lt.u32.totalorder %s230_s7, %s313_s3 }
 0x120   :  { %p236_p7 = pnand %p234_p6, %p231_p5 }
 0x122   :  { %239 = shalt.err (!%p236_p7)
}
 0x123   :  { %159 = dma.vmem_to_hbm [thread:$0]  %s157_s1, 32, %s313_s3, [#allocation4]  }
 0x124   :  { %240 = dma.done.wait [#allocation4], 32  }
 0x125   :  { %241 = vsyncadd [#allocation4], 4294967264 }
 0x126   :  { %163 = vsyncpa [#allocation4], 1 }

</bundles_post_ra>
